<compile_context>
chip_gen: v7x
topology: tpu7x:2x2x1
jax: 0.10.0
libtpu: 0.0.40
codegen_flags: <defaults>
</compile_context>

<pallas_src>
import jax
import jax.numpy as jnp
import numpy as np
from jax import lax
from jax.experimental import pallas as pl
from jax.experimental.pallas import tpu as pltpu

HIDDEN = 64
NOISE = 0.01
NS_ITERS = 12  # Newton-Schulz iterations for the 64x64 SPD inverse


# ----------------------------------------------------------------------------
# Fused kernel (per batch b):
#   phi       = MLP(concat(Xc[b], x[b]))
#   A0        = L0 L0^T ;  f0^T = K0^T A0
#   A         = cphi^T cphi + A0
#   f^T       = Y^T cphi + f0^T
#   X         = A^{-1}            (Newton-Schulz on the MXU, A SPD)
#   R         = ([phix; f^T] X) phix^T
#   sigma     = (1 + R[:Nt]) * noise ;  preds^T = R[Nt]
# ----------------------------------------------------------------------------
def make_fused_kernel(Nc, Nt, ns_iters):
    def kernel(xc_ref, xq_ref, y_ref,
               w1_ref, b1_ref, w2_ref, b2_ref, w3_ref, b3_ref,
               l0_ref, k0_ref,
               preds_ref, sigma_ref):
        # ---- phi MLP on this batch's context + query rows (single pass) -----
        rows = jnp.concatenate([xc_ref[0], xq_ref[0]], axis=0)       # (Nc+Nt, 1)
        # first layer has in_features = 1 -> broadcast multiply, no K=1 matmul
        h = jnp.tanh(rows * w1_ref[...] + b1_ref[...])               # (Nc+Nt, H)
        h = jnp.tanh(jnp.dot(h, w2_ref[...],
                             preferred_element_type=jnp.float32) + b2_ref[...])
        phi_all = jnp.dot(h, w3_ref[...],
                          preferred_element_type=jnp.float32) + b3_ref[...]
        cphi = phi_all[:Nc, :]                                       # (Nc, H)
        phix = phi_all[Nc:, :]                                       # (Nt, H)

        # ---- parameter-only terms (2 tiny matmuls, recomputed per step so the
        #      grid axis can stay "parallel" on multi-TC chips) ---------------
        l0 = l0_ref[...]
        a0 = lax.dot_general(l0, l0, (((1,), (1,)), ((), ())),
                             preferred_element_type=jnp.float32)     # L0 L0^T
        f0t = lax.dot_general(k0_ref[...], a0, (((0,), (0,)), ((), ())),
                              preferred_element_type=jnp.float32)    # (1, H)

        # ---- per-batch statistics (transposes absorbed by dot_general) ------
        a = lax.dot_general(cphi, cphi, (((0,), (0,)), ((), ())),
                            preferred_element_type=jnp.float32) + a0  # (H, H)
        ft = lax.dot_general(y_ref[0], cphi, (((0,), (0,)), ((), ())),
                             preferred_element_type=jnp.float32) + f0t  # (1, H)

        # ---- SPD inverse via Newton-Schulz (replaces torch.inverse) ---------
        # X0 = I / ||A||_inf  =>  spec(A X0) in (0, 1], guaranteed convergence.
        # TODO(synk): for an ill-conditioned trained L0 / much larger Nc, raise
        # NS_ITERS or switch to a Woodbury rank-Nc update against A0^{-1}.
        ii = lax.broadcasted_iota(jnp.int32, (HIDDEN, HIDDEN), 0)
        jj = lax.broadcasted_iota(jnp.int32, (HIDDEN, HIDDEN), 1)
        eye = (ii == jj).astype(jnp.float32)
        norm = jnp.max(jnp.sum(jnp.abs(a), axis=1, keepdims=True),
                       axis=0, keepdims=True)                        # (1, 1)
        x0 = eye / norm

        def ns_body(_, xk):
            ax = jnp.dot(a, xk, preferred_element_type=jnp.float32)
            return 2.0 * xk - jnp.dot(xk, ax, preferred_element_type=jnp.float32)

        x_inv = lax.fori_loop(0, ns_iters, ns_body, x0, unroll=True)

        # ---- epilogue: 2 matmuls instead of 4 --------------------------------
        m = jnp.concatenate([phix, ft], axis=0)                      # (Nt+1, H)
        mx = jnp.dot(m, x_inv, preferred_element_type=jnp.float32)   # (Nt+1, H)
        r = lax.dot_general(mx, phix, (((1,), (1,)), ((), ())),
                            preferred_element_type=jnp.float32)      # (Nt+1, Nt)
        sigma_ref[0] = (1.0 + r[:Nt, :]) * NOISE                     # (Nt, Nt)
        preds_ref[0] = r[Nt:, :]                                     # (1, Nt)

    return kernel


# ----------------------------------------------------------------------------
# Forward wrapper — one pallas_call total.
# ----------------------------------------------------------------------------
def alpaca_forward(params, X_context, Y_context, x):
    B, Nc, _ = X_context.shape
    Nt = x.shape[1]
    H = HIDDEN

    def batch3(shape):
        return pl.BlockSpec(shape, lambda b: (b, 0, 0))

    def const2(shape):
        return pl.BlockSpec(shape, lambda b: (0, 0))

    preds_row, sigma = pl.pallas_call(
        make_fused_kernel(Nc, Nt, NS_ITERS),
        grid=(B,),
        out_shape=(
            jax.ShapeDtypeStruct((B, 1, Nt), jnp.float32),
            jax.ShapeDtypeStruct((B, Nt, Nt), jnp.float32),
        ),
        in_specs=[
            batch3((1, Nc, 1)),                      # X_context
            batch3((1, Nt, 1)),                      # x (query)
            batch3((1, Nc, 1)),                      # Y_context
            const2((1, H)), const2((1, H)),          # w1, b1
            const2((H, H)), const2((1, H)),          # w2, b2
            const2((H, H)), const2((1, H)),          # w3, b3
            const2((H, H)), const2((H, 1)),          # L0, K0
        ],
        out_specs=(
            batch3((1, 1, Nt)),
            batch3((1, Nt, Nt)),
        ),
        # Per-step VMEM footprint is < 100 KiB -> no vmem_limit override needed
        # even under v7x's 64 MiB ceiling.  If Nc/Nt are ever scaled up, tile
        # the Nt axis of sigma and set vmem_limit_bytes here.
        compiler_params=pltpu.CompilerParams(dimension_semantics=("parallel",)),
    )(X_context, x, Y_context,
      params["w1"], params["b1"], params["w2"], params["b2"],
      params["w3"], params["b3"], params["L0"], params["K0"])

    # (B, 1, Nt) and (B, Nt, 1) share the same linear order -> trivial reshape
    preds = preds_row.reshape(B, Nt, 1)
    return preds, sigma


# ----------------------------------------------------------------------------
# Pure-JAX reference (mirrors the PyTorch forward exactly)
# ----------------------------------------------------------------------------
def alpaca_ref(params, Xc, Yc, x):
    def phi(z):
        h = jnp.tanh(z @ params["w1"] + params["b1"])
        h = jnp.tanh(h @ params["w2"] + params["b2"])
        return h @ params["w3"] + params["b3"]

    cphi = phi(Xc)                                       # (B, Nc, H)
    phix = phi(x)                                        # (B, Nt, H)
    A0 = params["L0"] @ params["L0"].T
    A_ctx = jnp.einsum("bnh,bnk->bhk", cphi, cphi) + A0
    factor = jnp.einsum("bnh,bnd->bhd", cphi, Yc) + (A0 @ params["K0"])[None]
    Ainv = jnp.linalg.inv(A_ctx)
    K = Ainv @ factor
    sigma = (1.0 + jnp.einsum("bnh,bhk,bmk->bnm", phix, Ainv, phix)) * NOISE
    preds = phix @ K
    return preds, sigma


# ----------------------------------------------------------------------------
# Deterministic parameter init (synthetic; no checkpoint loading)
# ----------------------------------------------------------------------------
def make_params(key):
    ks = jax.random.split(key, 8)

    def uinit(k, shape, fan_in):
        bound = 1.0 / np.sqrt(fan_in)
        return jax.random.uniform(k, shape, jnp.float32, -bound, bound)

    params = {
        "w1": uinit(ks[0], (1, HIDDEN), 1),
        "b1": uinit(ks[1], (1, HIDDEN), 1),
        "w2": uinit(ks[2], (HIDDEN, HIDDEN), HIDDEN),
        "b2": uinit(ks[3], (1, HIDDEN), HIDDEN),
        "w3": uinit(ks[4], (HIDDEN, HIDDEN), HIDDEN),
        "b3": uinit(ks[5], (1, HIDDEN), HIDDEN),
        # xavier-scale K_0 (shape (H, 1) like the torch parameter)
        "K0": jax.random.uniform(ks[6], (HIDDEN, 1), jnp.float32, -1.0, 1.0)
        * np.sqrt(6.0 / (HIDDEN + 1)),
        # well-conditioned deterministic L_0 so A_context inversion is stable
        "L0": jnp.eye(HIDDEN, dtype=jnp.float32)
        + 0.05 * jax.random.uniform(ks[7], (HIDDEN, HIDDEN), jnp.float32, -1.0, 1.0),
    }
    return params


if __name__ == "__main__":
    B, Nc, Nt = 2, 8, 8
    key = jax.random.PRNGKey(0)
    kp, kx, ky, kq = jax.random.split(key, 4)

    params = make_params(kp)
    X_context = jax.random.normal(kx, (B, Nc, 1), jnp.float32)
    Y_context = jax.random.normal(ky, (B, Nc, 1), jnp.float32)
    x_query = jax.random.normal(kq, (B, Nt, 1), jnp.float32)

    fwd = jax.jit(alpaca_forward)
    preds, sigma = jax.block_until_ready(fwd(params, X_context, Y_context, x_query))

    assert preds.shape == (B, Nt, 1)
    assert sigma.shape == (B, Nt, Nt)

    preds_ref, sigma_ref = alpaca_ref(params, X_context, Y_context, x_query)
    np.testing.assert_allclose(np.asarray(preds), np.asarray(preds_ref),
                               rtol=1e-3, atol=1e-4)
    np.testing.assert_allclose(np.asarray(sigma), np.asarray(sigma_ref),
                               rtol=1e-3, atol=1e-4)

    print("KERNEL_OK")
</pallas_src>

<mosaic_0001>
module attributes {stable_mosaic.version = 11 : i64} {
  func.func @kernel(%arg0: i32, %arg1: memref<1x8x1xf32, #tpu.memory_space<vmem>>, %arg2: memref<1x8x1xf32, #tpu.memory_space<vmem>>, %arg3: memref<1x8x1xf32, #tpu.memory_space<vmem>>, %arg4: memref<1x64xf32, #tpu.memory_space<vmem>>, %arg5: memref<1x64xf32, #tpu.memory_space<vmem>>, %arg6: memref<64x64xf32, #tpu.memory_space<vmem>>, %arg7: memref<1x64xf32, #tpu.memory_space<vmem>>, %arg8: memref<64x64xf32, #tpu.memory_space<vmem>>, %arg9: memref<1x64xf32, #tpu.memory_space<vmem>>, %arg10: memref<64x64xf32, #tpu.memory_space<vmem>>, %arg11: memref<64x1xf32, #tpu.memory_space<vmem>>, %arg12: memref<1x1x8xf32, #tpu.memory_space<vmem>>, %arg13: memref<1x8x8xf32, #tpu.memory_space<vmem>>) attributes {dimension_semantics = [#tpu.dimension_semantics<parallel>], iteration_bounds = array<i64: 2>, scalar_prefetch = 0 : i64, scratch_operands = 0 : i64, tpu.core_type = #tpu.core_type<tc>, window_params = [{transform_indices = @transform_0, window_bounds = array<i64: 1, 8, 1>}, {transform_indices = @transform_1, window_bounds = array<i64: 1, 8, 1>}, {transform_indices = @transform_2, window_bounds = array<i64: 1, 8, 1>}, {pipeline_mode = #tpu.pipeline_mode<synchronous>, transform_indices = @transform_3, window_bounds = array<i64: 1, 64>}, {pipeline_mode = #tpu.pipeline_mode<synchronous>, transform_indices = @transform_4, window_bounds = array<i64: 1, 64>}, {pipeline_mode = #tpu.pipeline_mode<synchronous>, transform_indices = @transform_5, window_bounds = array<i64: 64, 64>}, {pipeline_mode = #tpu.pipeline_mode<synchronous>, transform_indices = @transform_6, window_bounds = array<i64: 1, 64>}, {pipeline_mode = #tpu.pipeline_mode<synchronous>, transform_indices = @transform_7, window_bounds = array<i64: 64, 64>}, {pipeline_mode = #tpu.pipeline_mode<synchronous>, transform_indices = @transform_8, window_bounds = array<i64: 1, 64>}, {pipeline_mode = #tpu.pipeline_mode<synchronous>, transform_indices = @transform_9, window_bounds = array<i64: 64, 64>}, {pipeline_mode = #tpu.pipeline_mode<synchronous>, transform_indices = @transform_10, window_bounds = array<i64: 64, 1>}, {transform_indices = @transform_11, window_bounds = array<i64: 1, 1, 8>}, {transform_indices = @transform_12, window_bounds = array<i64: 1, 8, 8>}]} {
    %c0 = arith.constant 0 : index
    %c0_0 = arith.constant 0 : index
    %c0_1 = arith.constant 0 : index
    %0 = vector.load %arg1[%c0, %c0_0, %c0_1] : memref<1x8x1xf32, #tpu.memory_space<vmem>>, vector<1x8x1xf32>
    %1 = vector.shape_cast %0 : vector<1x8x1xf32> to vector<8x1xf32>
    %c0_2 = arith.constant 0 : index
    %c0_3 = arith.constant 0 : index
    %c0_4 = arith.constant 0 : index
    %2 = vector.load %arg2[%c0_2, %c0_3, %c0_4] : memref<1x8x1xf32, #tpu.memory_space<vmem>>, vector<1x8x1xf32>
    %3 = vector.shape_cast %2 : vector<1x8x1xf32> to vector<8x1xf32>
    %4 = tpu.concatenate %1, %3 in 0 : vector<8x1xf32>, vector<8x1xf32> -> vector<16x1xf32>
    %c0_5 = arith.constant 0 : index
    %c0_6 = arith.constant 0 : index
    %5 = vector.load %arg4[%c0_5, %c0_6] : memref<1x64xf32, #tpu.memory_space<vmem>>, vector<1x64xf32>
    %6 = vector.broadcast %4 : vector<16x1xf32> to vector<16x64xf32>
    %7 = vector.broadcast %5 : vector<1x64xf32> to vector<16x64xf32>
    %8 = arith.mulf %6, %7 : vector<16x64xf32>
    %c0_7 = arith.constant 0 : index
    %c0_8 = arith.constant 0 : index
    %9 = vector.load %arg5[%c0_7, %c0_8] : memref<1x64xf32, #tpu.memory_space<vmem>>, vector<1x64xf32>
    %10 = vector.broadcast %9 : vector<1x64xf32> to vector<16x64xf32>
    %11 = arith.addf %8, %10 : vector<16x64xf32>
    %12 = math.tanh %11 : vector<16x64xf32>
    %c0_9 = arith.constant 0 : index
    %c0_10 = arith.constant 0 : index
    %13 = vector.load %arg6[%c0_9, %c0_10] : memref<64x64xf32, #tpu.memory_space<vmem>>, vector<64x64xf32>
    %cst = arith.constant dense<0.000000e+00> : vector<16x64xf32>
    %14 = tpu.matmul %12, %13, %cst {dimension_numbers = #tpu.dot_dimension_numbers<[1], [0], [0], [1], [0, 0, 1, 1], [], []>} : vector<16x64xf32>, vector<64x64xf32>, vector<16x64xf32> -> vector<16x64xf32>
    %c0_11 = arith.constant 0 : index
    %c0_12 = arith.constant 0 : index
    %15 = vector.load %arg7[%c0_11, %c0_12] : memref<1x64xf32, #tpu.memory_space<vmem>>, vector<1x64xf32>
    %16 = vector.broadcast %15 : vector<1x64xf32> to vector<16x64xf32>
    %17 = arith.addf %14, %16 : vector<16x64xf32>
    %18 = math.tanh %17 : vector<16x64xf32>
    %c0_13 = arith.constant 0 : index
    %c0_14 = arith.constant 0 : index
    %19 = vector.load %arg8[%c0_13, %c0_14] : memref<64x64xf32, #tpu.memory_space<vmem>>, vector<64x64xf32>
    %cst_15 = arith.constant dense<0.000000e+00> : vector<16x64xf32>
    %20 = tpu.matmul %18, %19, %cst_15 {dimension_numbers = #tpu.dot_dimension_numbers<[1], [0], [0], [1], [0, 0, 1, 1], [], []>} : vector<16x64xf32>, vector<64x64xf32>, vector<16x64xf32> -> vector<16x64xf32>
    %c0_16 = arith.constant 0 : index
    %c0_17 = arith.constant 0 : index
    %21 = vector.load %arg9[%c0_16, %c0_17] : memref<1x64xf32, #tpu.memory_space<vmem>>, vector<1x64xf32>
    %22 = vector.broadcast %21 : vector<1x64xf32> to vector<16x64xf32>
    %23 = arith.addf %20, %22 : vector<16x64xf32>
    %24 = vector.extract_strided_slice %23 {offsets = [0, 0], sizes = [8, 64], strides = [1, 1]} : vector<16x64xf32> to vector<8x64xf32>
    %25 = vector.extract_strided_slice %23 {offsets = [8, 0], sizes = [8, 64], strides = [1, 1]} : vector<16x64xf32> to vector<8x64xf32>
    %c0_18 = arith.constant 0 : index
    %c0_19 = arith.constant 0 : index
    %26 = vector.load %arg10[%c0_18, %c0_19] : memref<64x64xf32, #tpu.memory_space<vmem>>, vector<64x64xf32>
    %cst_20 = arith.constant dense<0.000000e+00> : vector<64x64xf32>
    %27 = tpu.matmul %26, %26, %cst_20 {dimension_numbers = #tpu.dot_dimension_numbers<[1], [1], [0], [0], [0, 0, 1, 0], [], []>} : vector<64x64xf32>, vector<64x64xf32>, vector<64x64xf32> -> vector<64x64xf32>
    %c0_21 = arith.constant 0 : index
    %c0_22 = arith.constant 0 : index
    %28 = vector.load %arg11[%c0_21, %c0_22] : memref<64x1xf32, #tpu.memory_space<vmem>>, vector<64x1xf32>
    %cst_23 = arith.constant dense<0.000000e+00> : vector<1x64xf32>
    %29 = tpu.matmul %28, %27, %cst_23 {dimension_numbers = #tpu.dot_dimension_numbers<[0], [0], [1], [1], [0, 1, 1, 1], [], []>} : vector<64x1xf32>, vector<64x64xf32>, vector<1x64xf32> -> vector<1x64xf32>
    %cst_24 = arith.constant dense<0.000000e+00> : vector<64x64xf32>
    %30 = tpu.matmul %24, %24, %cst_24 {dimension_numbers = #tpu.dot_dimension_numbers<[0], [0], [1], [1], [0, 1, 1, 1], [], []>} : vector<8x64xf32>, vector<8x64xf32>, vector<64x64xf32> -> vector<64x64xf32>
    %31 = arith.addf %30, %27 : vector<64x64xf32>
    %c0_25 = arith.constant 0 : index
    %c0_26 = arith.constant 0 : index
    %c0_27 = arith.constant 0 : index
    %32 = vector.load %arg3[%c0_25, %c0_26, %c0_27] : memref<1x8x1xf32, #tpu.memory_space<vmem>>, vector<1x8x1xf32>
    %33 = vector.shape_cast %32 : vector<1x8x1xf32> to vector<8x1xf32>
    %cst_28 = arith.constant dense<0.000000e+00> : vector<1x64xf32>
    %34 = tpu.matmul %33, %24, %cst_28 {dimension_numbers = #tpu.dot_dimension_numbers<[0], [0], [1], [1], [0, 1, 1, 1], [], []>} : vector<8x1xf32>, vector<8x64xf32>, vector<1x64xf32> -> vector<1x64xf32>
    %35 = arith.addf %34, %29 : vector<1x64xf32>
    %36 = tpu.iota {dimensions = array<i32: 0>} : vector<64x64xi32>
    %37 = tpu.iota {dimensions = array<i32: 1>} : vector<64x64xi32>
    %38 = arith.cmpi eq, %36, %37 : vector<64x64xi32>
    %39 = arith.extui %38 : vector<64x64xi1> to vector<64x64xi32>
    %40 = arith.sitofp %39 : vector<64x64xi32> to vector<64x64xf32>
    %41 = math.absf %31 : vector<64x64xf32>
    %cst_29 = arith.constant dense<0.000000e+00> : vector<64xf32>
    %42 = vector.multi_reduction <add>, %41, %cst_29 [1] : vector<64x64xf32> to vector<64xf32>
    %43 = vector.shape_cast %42 : vector<64xf32> to vector<64x1xf32>
    %cst_30 = arith.constant dense<0xFF800000> : vector<1xf32>
    %44 = vector.multi_reduction <maximumf>, %43, %cst_30 [0] : vector<64x1xf32> to vector<1xf32>
    %45 = vector.shape_cast %44 : vector<1xf32> to vector<1x1xf32>
    %46 = vector.broadcast %45 : vector<1x1xf32> to vector<64x64xf32>
    %47 = arith.divf %40, %46 : vector<64x64xf32>
    %c0_i32 = arith.constant 0 : i32
    %cst_31 = arith.constant dense<0.000000e+00> : vector<64x64xf32>
    %48 = tpu.matmul %31, %47, %cst_31 {dimension_numbers = #tpu.dot_dimension_numbers<[1], [0], [0], [1], [0, 0, 1, 1], [], []>} : vector<64x64xf32>, vector<64x64xf32>, vector<64x64xf32> -> vector<64x64xf32>
    %cst_32 = arith.constant 2.000000e+00 : f32
    %49 = vector.broadcast %cst_32 : f32 to vector<64x64xf32>
    %50 = arith.mulf %49, %47 : vector<64x64xf32>
    %cst_33 = arith.constant dense<0.000000e+00> : vector<64x64xf32>
    %51 = tpu.matmul %47, %48, %cst_33 {dimension_numbers = #tpu.dot_dimension_numbers<[1], [0], [0], [1], [0, 0, 1, 1], [], []>} : vector<64x64xf32>, vector<64x64xf32>, vector<64x64xf32> -> vector<64x64xf32>
    %52 = arith.subf %50, %51 : vector<64x64xf32>
    %c1_i32 = arith.constant 1 : i32
    %cst_34 = arith.constant dense<0.000000e+00> : vector<64x64xf32>
    %53 = tpu.matmul %31, %52, %cst_34 {dimension_numbers = #tpu.dot_dimension_numbers<[1], [0], [0], [1], [0, 0, 1, 1], [], []>} : vector<64x64xf32>, vector<64x64xf32>, vector<64x64xf32> -> vector<64x64xf32>
    %cst_35 = arith.constant 2.000000e+00 : f32
    %54 = vector.broadcast %cst_35 : f32 to vector<64x64xf32>
    %55 = arith.mulf %54, %52 : vector<64x64xf32>
    %cst_36 = arith.constant dense<0.000000e+00> : vector<64x64xf32>
    %56 = tpu.matmul %52, %53, %cst_36 {dimension_numbers = #tpu.dot_dimension_numbers<[1], [0], [0], [1], [0, 0, 1, 1], [], []>} : vector<64x64xf32>, vector<64x64xf32>, vector<64x64xf32> -> vector<64x64xf32>
    %57 = arith.subf %55, %56 : vector<64x64xf32>
    %c2_i32 = arith.constant 2 : i32
    %cst_37 = arith.constant dense<0.000000e+00> : vector<64x64xf32>
    %58 = tpu.matmul %31, %57, %cst_37 {dimension_numbers = #tpu.dot_dimension_numbers<[1], [0], [0], [1], [0, 0, 1, 1], [], []>} : vector<64x64xf32>, vector<64x64xf32>, vector<64x64xf32> -> vector<64x64xf32>
    %cst_38 = arith.constant 2.000000e+00 : f32
    %59 = vector.broadcast %cst_38 : f32 to vector<64x64xf32>
    %60 = arith.mulf %59, %57 : vector<64x64xf32>
    %cst_39 = arith.constant dense<0.000000e+00> : vector<64x64xf32>
    %61 = tpu.matmul %57, %58, %cst_39 {dimension_numbers = #tpu.dot_dimension_numbers<[1], [0], [0], [1], [0, 0, 1, 1], [], []>} : vector<64x64xf32>, vector<64x64xf32>, vector<64x64xf32> -> vector<64x64xf32>
    %62 = arith.subf %60, %61 : vector<64x64xf32>
    %c3_i32 = arith.constant 3 : i32
    %cst_40 = arith.constant dense<0.000000e+00> : vector<64x64xf32>
    %63 = tpu.matmul %31, %62, %cst_40 {dimension_numbers = #tpu.dot_dimension_numbers<[1], [0], [0], [1], [0, 0, 1, 1], [], []>} : vector<64x64xf32>, vector<64x64xf32>, vector<64x64xf32> -> vector<64x64xf32>
    %cst_41 = arith.constant 2.000000e+00 : f32
    %64 = vector.broadcast %cst_41 : f32 to vector<64x64xf32>
    %65 = arith.mulf %64, %62 : vector<64x64xf32>
    %cst_42 = arith.constant dense<0.000000e+00> : vector<64x64xf32>
    %66 = tpu.matmul %62, %63, %cst_42 {dimension_numbers = #tpu.dot_dimension_numbers<[1], [0], [0], [1], [0, 0, 1, 1], [], []>} : vector<64x64xf32>, vector<64x64xf32>, vector<64x64xf32> -> vector<64x64xf32>
    %67 = arith.subf %65, %66 : vector<64x64xf32>
    %c4_i32 = arith.constant 4 : i32
    %cst_43 = arith.constant dense<0.000000e+00> : vector<64x64xf32>
    %68 = tpu.matmul %31, %67, %cst_43 {dimension_numbers = #tpu.dot_dimension_numbers<[1], [0], [0], [1], [0, 0, 1, 1], [], []>} : vector<64x64xf32>, vector<64x64xf32>, vector<64x64xf32> -> vector<64x64xf32>
    %cst_44 = arith.constant 2.000000e+00 : f32
    %69 = vector.broadcast %cst_44 : f32 to vector<64x64xf32>
    %70 = arith.mulf %69, %67 : vector<64x64xf32>
    %cst_45 = arith.constant dense<0.000000e+00> : vector<64x64xf32>
    %71 = tpu.matmul %67, %68, %cst_45 {dimension_numbers = #tpu.dot_dimension_numbers<[1], [0], [0], [1], [0, 0, 1, 1], [], []>} : vector<64x64xf32>, vector<64x64xf32>, vector<64x64xf32> -> vector<64x64xf32>
    %72 = arith.subf %70, %71 : vector<64x64xf32>
    %c5_i32 = arith.constant 5 : i32
    %cst_46 = arith.constant dense<0.000000e+00> : vector<64x64xf32>
    %73 = tpu.matmul %31, %72, %cst_46 {dimension_numbers = #tpu.dot_dimension_numbers<[1], [0], [0], [1], [0, 0, 1, 1], [], []>} : vector<64x64xf32>, vector<64x64xf32>, vector<64x64xf32> -> vector<64x64xf32>
    %cst_47 = arith.constant 2.000000e+00 : f32
    %74 = vector.broadcast %cst_47 : f32 to vector<64x64xf32>
    %75 = arith.mulf %74, %72 : vector<64x64xf32>
    %cst_48 = arith.constant dense<0.000000e+00> : vector<64x64xf32>
    %76 = tpu.matmul %72, %73, %cst_48 {dimension_numbers = #tpu.dot_dimension_numbers<[1], [0], [0], [1], [0, 0, 1, 1], [], []>} : vector<64x64xf32>, vector<64x64xf32>, vector<64x64xf32> -> vector<64x64xf32>
    %77 = arith.subf %75, %76 : vector<64x64xf32>
    %c6_i32 = arith.constant 6 : i32
    %cst_49 = arith.constant dense<0.000000e+00> : vector<64x64xf32>
    %78 = tpu.matmul %31, %77, %cst_49 {dimension_numbers = #tpu.dot_dimension_numbers<[1], [0], [0], [1], [0, 0, 1, 1], [], []>} : vector<64x64xf32>, vector<64x64xf32>, vector<64x64xf32> -> vector<64x64xf32>
    %cst_50 = arith.constant 2.000000e+00 : f32
    %79 = vector.broadcast %cst_50 : f32 to vector<64x64xf32>
    %80 = arith.mulf %79, %77 : vector<64x64xf32>
    %cst_51 = arith.constant dense<0.000000e+00> : vector<64x64xf32>
    %81 = tpu.matmul %77, %78, %cst_51 {dimension_numbers = #tpu.dot_dimension_numbers<[1], [0], [0], [1], [0, 0, 1, 1], [], []>} : vector<64x64xf32>, vector<64x64xf32>, vector<64x64xf32> -> vector<64x64xf32>
    %82 = arith.subf %80, %81 : vector<64x64xf32>
    %c7_i32 = arith.constant 7 : i32
    %cst_52 = arith.constant dense<0.000000e+00> : vector<64x64xf32>
    %83 = tpu.matmul %31, %82, %cst_52 {dimension_numbers = #tpu.dot_dimension_numbers<[1], [0], [0], [1], [0, 0, 1, 1], [], []>} : vector<64x64xf32>, vector<64x64xf32>, vector<64x64xf32> -> vector<64x64xf32>
    %cst_53 = arith.constant 2.000000e+00 : f32
    %84 = vector.broadcast %cst_53 : f32 to vector<64x64xf32>
    %85 = arith.mulf %84, %82 : vector<64x64xf32>
    %cst_54 = arith.constant dense<0.000000e+00> : vector<64x64xf32>
    %86 = tpu.matmul %82, %83, %cst_54 {dimension_numbers = #tpu.dot_dimension_numbers<[1], [0], [0], [1], [0, 0, 1, 1], [], []>} : vector<64x64xf32>, vector<64x64xf32>, vector<64x64xf32> -> vector<64x64xf32>
    %87 = arith.subf %85, %86 : vector<64x64xf32>
    %c8_i32 = arith.constant 8 : i32
    %cst_55 = arith.constant dense<0.000000e+00> : vector<64x64xf32>
    %88 = tpu.matmul %31, %87, %cst_55 {dimension_numbers = #tpu.dot_dimension_numbers<[1], [0], [0], [1], [0, 0, 1, 1], [], []>} : vector<64x64xf32>, vector<64x64xf32>, vector<64x64xf32> -> vector<64x64xf32>
    %cst_56 = arith.constant 2.000000e+00 : f32
    %89 = vector.broadcast %cst_56 : f32 to vector<64x64xf32>
    %90 = arith.mulf %89, %87 : vector<64x64xf32>
    %cst_57 = arith.constant dense<0.000000e+00> : vector<64x64xf32>
    %91 = tpu.matmul %87, %88, %cst_57 {dimension_numbers = #tpu.dot_dimension_numbers<[1], [0], [0], [1], [0, 0, 1, 1], [], []>} : vector<64x64xf32>, vector<64x64xf32>, vector<64x64xf32> -> vector<64x64xf32>
    %92 = arith.subf %90, %91 : vector<64x64xf32>
    %c9_i32 = arith.constant 9 : i32
    %cst_58 = arith.constant dense<0.000000e+00> : vector<64x64xf32>
    %93 = tpu.matmul %31, %92, %cst_58 {dimension_numbers = #tpu.dot_dimension_numbers<[1], [0], [0], [1], [0, 0, 1, 1], [], []>} : vector<64x64xf32>, vector<64x64xf32>, vector<64x64xf32> -> vector<64x64xf32>
    %cst_59 = arith.constant 2.000000e+00 : f32
    %94 = vector.broadcast %cst_59 : f32 to vector<64x64xf32>
    %95 = arith.mulf %94, %92 : vector<64x64xf32>
    %cst_60 = arith.constant dense<0.000000e+00> : vector<64x64xf32>
    %96 = tpu.matmul %92, %93, %cst_60 {dimension_numbers = #tpu.dot_dimension_numbers<[1], [0], [0], [1], [0, 0, 1, 1], [], []>} : vector<64x64xf32>, vector<64x64xf32>, vector<64x64xf32> -> vector<64x64xf32>
    %97 = arith.subf %95, %96 : vector<64x64xf32>
    %c10_i32 = arith.constant 10 : i32
    %cst_61 = arith.constant dense<0.000000e+00> : vector<64x64xf32>
    %98 = tpu.matmul %31, %97, %cst_61 {dimension_numbers = #tpu.dot_dimension_numbers<[1], [0], [0], [1], [0, 0, 1, 1], [], []>} : vector<64x64xf32>, vector<64x64xf32>, vector<64x64xf32> -> vector<64x64xf32>
    %cst_62 = arith.constant 2.000000e+00 : f32
    %99 = vector.broadcast %cst_62 : f32 to vector<64x64xf32>
    %100 = arith.mulf %99, %97 : vector<64x64xf32>
    %cst_63 = arith.constant dense<0.000000e+00> : vector<64x64xf32>
    %101 = tpu.matmul %97, %98, %cst_63 {dimension_numbers = #tpu.dot_dimension_numbers<[1], [0], [0], [1], [0, 0, 1, 1], [], []>} : vector<64x64xf32>, vector<64x64xf32>, vector<64x64xf32> -> vector<64x64xf32>
    %102 = arith.subf %100, %101 : vector<64x64xf32>
    %c11_i32 = arith.constant 11 : i32
    %cst_64 = arith.constant dense<0.000000e+00> : vector<64x64xf32>
    %103 = tpu.matmul %31, %102, %cst_64 {dimension_numbers = #tpu.dot_dimension_numbers<[1], [0], [0], [1], [0, 0, 1, 1], [], []>} : vector<64x64xf32>, vector<64x64xf32>, vector<64x64xf32> -> vector<64x64xf32>
    %cst_65 = arith.constant 2.000000e+00 : f32
    %104 = vector.broadcast %cst_65 : f32 to vector<64x64xf32>
    %105 = arith.mulf %104, %102 : vector<64x64xf32>
    %cst_66 = arith.constant dense<0.000000e+00> : vector<64x64xf32>
    %106 = tpu.matmul %102, %103, %cst_66 {dimension_numbers = #tpu.dot_dimension_numbers<[1], [0], [0], [1], [0, 0, 1, 1], [], []>} : vector<64x64xf32>, vector<64x64xf32>, vector<64x64xf32> -> vector<64x64xf32>
    %107 = arith.subf %105, %106 : vector<64x64xf32>
    %108 = tpu.concatenate %25, %35 in 0 : vector<8x64xf32>, vector<1x64xf32> -> vector<9x64xf32>
    %cst_67 = arith.constant dense<0.000000e+00> : vector<9x64xf32>
    %109 = tpu.matmul %108, %107, %cst_67 {dimension_numbers = #tpu.dot_dimension_numbers<[1], [0], [0], [1], [0, 0, 1, 1], [], []>} : vector<9x64xf32>, vector<64x64xf32>, vector<9x64xf32> -> vector<9x64xf32>
    %cst_68 = arith.constant dense<0.000000e+00> : vector<9x8xf32>
    %110 = tpu.matmul %109, %25, %cst_68 {dimension_numbers = #tpu.dot_dimension_numbers<[1], [1], [0], [0], [0, 0, 1, 0], [], []>} : vector<9x64xf32>, vector<8x64xf32>, vector<9x8xf32> -> vector<9x8xf32>
    %111 = vector.extract_strided_slice %110 {offsets = [0, 0], sizes = [8, 8], strides = [1, 1]} : vector<9x8xf32> to vector<8x8xf32>
    %cst_69 = arith.constant 1.000000e+00 : f32
    %112 = vector.broadcast %cst_69 : f32 to vector<8x8xf32>
    %113 = arith.addf %112, %111 : vector<8x8xf32>
    %cst_70 = arith.constant 0.00999999977 : f32
    %114 = vector.broadcast %cst_70 : f32 to vector<8x8xf32>
    %115 = arith.mulf %113, %114 : vector<8x8xf32>
    %c0_71 = arith.constant 0 : index
    %c0_72 = arith.constant 0 : index
    %c0_73 = arith.constant 0 : index
    %116 = vector.load %arg13[%c0_71, %c0_72, %c0_73] : memref<1x8x8xf32, #tpu.memory_space<vmem>>, vector<1x8x8xf32>
    %117 = vector.shape_cast %116 : vector<1x8x8xf32> to vector<8x8xf32>
    %118 = vector.shape_cast %115 : vector<8x8xf32> to vector<1x8x8xf32>
    tpu.vector_store %arg13[%c0_71, %c0_72, %c0_73], %118 {strides = array<i32>} : memref<1x8x8xf32, #tpu.memory_space<vmem>>, vector<1x8x8xf32>,
    %119 = vector.extract_strided_slice %110 {offsets = [8, 0], sizes = [1, 8], strides = [1, 1]} : vector<9x8xf32> to vector<1x8xf32>
    %c0_74 = arith.constant 0 : index
    %c0_75 = arith.constant 0 : index
    %c0_76 = arith.constant 0 : index
    %120 = vector.load %arg12[%c0_74, %c0_75, %c0_76] : memref<1x1x8xf32, #tpu.memory_space<vmem>>, vector<1x1x8xf32>
    %121 = vector.shape_cast %120 : vector<1x1x8xf32> to vector<1x8xf32>
    %122 = vector.shape_cast %119 : vector<1x8xf32> to vector<1x1x8xf32>
    tpu.vector_store %arg12[%c0_74, %c0_75, %c0_76], %122 {strides = array<i32>} : memref<1x1x8xf32, #tpu.memory_space<vmem>>, vector<1x1x8xf32>,
    return
  }
  func.func @transform_0(%arg0: i32) -> (i32, i32, i32) {
    %c0_i32 = arith.constant 0 : i32
    %c0_i32_0 = arith.constant 0 : i32
    %c0_i32_1 = arith.constant 0 : i32
    return %arg0, %c0_i32, %c0_i32_0 : i32, i32, i32
  }
  func.func @transform_1(%arg0: i32) -> (i32, i32, i32) {
    %c0_i32 = arith.constant 0 : i32
    %c0_i32_0 = arith.constant 0 : i32
    %c0_i32_1 = arith.constant 0 : i32
    return %arg0, %c0_i32, %c0_i32_0 : i32, i32, i32
  }
  func.func @transform_2(%arg0: i32) -> (i32, i32, i32) {
    %c0_i32 = arith.constant 0 : i32
    %c0_i32_0 = arith.constant 0 : i32
    %c0_i32_1 = arith.constant 0 : i32
    return %arg0, %c0_i32, %c0_i32_0 : i32, i32, i32
  }
  func.func @transform_3(%arg0: i32) -> (i32, i32) {
    %c0_i32 = arith.constant 0 : i32
    %c0_i32_0 = arith.constant 0 : i32
    %c0_i32_1 = arith.constant 0 : i32
    return %c0_i32, %c0_i32_0 : i32, i32
  }
  func.func @transform_4(%arg0: i32) -> (i32, i32) {
    %c0_i32 = arith.constant 0 : i32
    %c0_i32_0 = arith.constant 0 : i32
    %c0_i32_1 = arith.constant 0 : i32
    return %c0_i32, %c0_i32_0 : i32, i32
  }
  func.func @transform_5(%arg0: i32) -> (i32, i32) {
    %c0_i32 = arith.constant 0 : i32
    %c0_i32_0 = arith.constant 0 : i32
    %c0_i32_1 = arith.constant 0 : i32
    return %c0_i32, %c0_i32_0 : i32, i32
  }
  func.func @transform_6(%arg0: i32) -> (i32, i32) {
    %c0_i32 = arith.constant 0 : i32
    %c0_i32_0 = arith.constant 0 : i32
    %c0_i32_1 = arith.constant 0 : i32
    return %c0_i32, %c0_i32_0 : i32, i32
  }
  func.func @transform_7(%arg0: i32) -> (i32, i32) {
    %c0_i32 = arith.constant 0 : i32
    %c0_i32_0 = arith.constant 0 : i32
    %c0_i32_1 = arith.constant 0 : i32
    return %c0_i32, %c0_i32_0 : i32, i32
  }
  func.func @transform_8(%arg0: i32) -> (i32, i32) {
    %c0_i32 = arith.constant 0 : i32
    %c0_i32_0 = arith.constant 0 : i32
    %c0_i32_1 = arith.constant 0 : i32
    return %c0_i32, %c0_i32_0 : i32, i32
  }
  func.func @transform_9(%arg0: i32) -> (i32, i32) {
    %c0_i32 = arith.constant 0 : i32
    %c0_i32_0 = arith.constant 0 : i32
    %c0_i32_1 = arith.constant 0 : i32
    return %c0_i32, %c0_i32_0 : i32, i32
  }
  func.func @transform_10(%arg0: i32) -> (i32, i32) {
    %c0_i32 = arith.constant 0 : i32
    %c0_i32_0 = arith.constant 0 : i32
    %c0_i32_1 = arith.constant 0 : i32
    return %c0_i32, %c0_i32_0 : i32, i32
  }
  func.func @transform_11(%arg0: i32) -> (i32, i32, i32) {
    %c0_i32 = arith.constant 0 : i32
    %c0_i32_0 = arith.constant 0 : i32
    %c0_i32_1 = arith.constant 0 : i32
    return %arg0, %c0_i32, %c0_i32_0 : i32, i32, i32
  }
  func.func @transform_12(%arg0: i32) -> (i32, i32, i32) {
    %c0_i32 = arith.constant 0 : i32
    %c0_i32_0 = arith.constant 0 : i32
    %c0_i32_1 = arith.constant 0 : i32
    return %arg0, %c0_i32, %c0_i32_0 : i32, i32, i32
  }
}

</mosaic_0001>

<bundles_post_ra>
// kernel: alpaca_forward.1
= control target key start
LH: loop header
LB: loop body
LE: loop exit
PB: predicated region body
PF: predicated region fallthrough
CT: control target
= control target key end

     0   :  { %18 = vsyncpa [#allocation3], 0  ;;  %s8334_s0 = inlined_call_operand.vmem [shape: f32[2,8,1], index: 0, kind: input, shape index: {}]   ;;  %s8335_s1 = inlined_call_operand.vmem [shape: f32[2,8,1], index: 1, kind: input, shape index: {}]   ;;  %s8336_s2 = inlined_call_operand.vmem [shape: f32[2,8,1], index: 2, kind: input, shape index: {}]   ;;  %s8337_s3 = inlined_call_operand.vmem [shape: f32[1,64], index: 3, kind: input, shape index: {}]   ;;  %s8338_s4 = inlined_call_operand.hbm [shape: f32[1,64], index: 4, kind: input, shape index: {}]   ;;  %s8339_s5 = inlined_call_operand.vmem [shape: f32[64,64], index: 5, kind: input, shape index: {}]   ;;  %s8340_s6 = inlined_call_operand.hbm [shape: f32[1,64], index: 6, kind: input, shape index: {}]   ;;  %s8341_s7 = inlined_call_operand.vmem [shape: f32[64,64], index: 7, kind: input, shape index: {}]   ;;  %s8342_s8 = inlined_call_operand.hbm [shape: f32[1,64], index: 8, kind: input, shape index: {}]   ;;  %s8343_s9 = inlined_call_operand.hbm [shape: f32[64,64], index: 9, kind: input, shape index: {}]   ;;  %s8344_s10 = inlined_call_operand.vmem [shape: f32[64,1], index: 10, kind: input, shape index: {}]   ;;  %s8345_s11 = inlined_call_operand.hbm [shape: f32[2,1,8], index: 11, kind: output, shape index: {0}]   ;;  %s8346_s12 = inlined_call_operand.hbm [shape: f32[2,8,8], index: 12, kind: output, shape index: {1}]  }
   0x1   :  { %19 = vsyncpa [#allocation6], 0 }
   0x2   :  { %20 = vsyncpa [#allocation9], 0 }
   0x3   :  { %21 = vsyncpa [#allocation4], 0 }
   0x4   :  { %23 = vsyncpa [#allocation4 + $0x1], 0 }
   0x5   :  { %24 = vsyncpa [#allocation12], 0 }
   0x6   :  { %26 = vsyncpa [#allocation12 + $0x1], 0  ;;  %s7096_s21 = smov 0   ;;  %s7098_s22 = smov 0  }
   0x7   :  { %s7100_s23 = smov 0   ;;  %s7102_s24 = smov 0  }
   0x8 LB: > { %8356 = sst [smem:[#allocation18_spill]] %s7005_s21  ;;  %s7117_s25 = sadd.s32 4294967295, %s7017_s24   ;;  %s7017_s24 = sphi %s7102_s24, %s8381_s24   ;;  %s7013_s23 = sphi %s7100_s23, %s8383_s23   ;;  %s7009_s22 = sphi %s7098_s22, %s8385_s22   ;;  %s7005_s21 = sphi %s7096_s21, %s8384_s21  }
   0x9   : > { %8357 = sst [smem:[#allocation19_spill]] %s7013_s23  ;;  %s4714_s26 = sadd.s32 4294967294, %s7017_s24  }
   0xa   : > { %8358 = sst [smem:[#allocation20_spill]] %s7017_s24  ;;  %s7121_s27 = sadd.s32 1, %s7017_s24  }
   0xb   : > { %8359 = sst [smem:[#allocation21_spill]] %s7121_s27  ;;  %s285_s28 = sadd.s32 1, %s7013_s23 }
   0xc   : > { %s282_s29 = ssub.s32 %s7017_s24, %s7121_s27  ;;  %p295_p0 = scmp.ne.s32.totalorder %s7013_s23, %s7009_s22 }
   0xd   : > { %p283_p1 = scmp.eq.s32.totalorder %s282_s29, 0  ;;  %p296_p2 = scmp.eq.s32.totalorder %s7117_s25, 1 }
   0xe   : > { %p301_p3 = scmp.ne.s32.totalorder %s7009_s22, %s7005_s21  ;;  %p302_p4 = scmp.eq.s32.totalorder %s4714_s26, 1 }
   0xf   : > { %s7132_s30 = scalar_select %p283_p1, %s7013_s23, %s285_s28  }
  0x10   : > { %p7134_p5 = por %p296_p2, %p295_p0  ;;  %p7138_p6 = por %p302_p4, %p301_p3 }
  0x11   : > { %8360 = sst [smem:[#allocation22_spill]] %s7132_s30  ;;  %p4715_p7 = scmp.ge.s32.totalorder %s7017_s24, 1 }
  0x12   : > { %s8361_s13 = scalar_select %p7134_p5, 1, 0 }
  0x13   : > { %s8362_s14 = scalar_select %p7138_p6, 1, 0 }
  0x14   : > { %p335_p8 = scmp.lt.s32.totalorder %s7017_s24, 3  ;;  %p8351_p9 = scmp.eq.s32.totalorder %s7117_s25, 0 }
  0x15   : > { %8363 = sst [smem:[#allocation23_spill]] %s8362_s14  ;;  %s7019_s16 = smov [#allocation5]  }
  0x16   : > { %p7145_p10 = pnand %p4715_p7, %p335_p8  ;;  %s365_s17 = sshll.u32 %s7019_s16, 4  ;;  %s366_s17 = int_to_ptr.vmem [resolvable:$true] %s365_s17 }
  0x17   : > { %s7020_s18 = smov [#allocation2]   ;;  %s7021_s26 = smov [#allocation7]  }
  0x18   : > { %s8364_s15 = scalar_select %p7145_p10, 1, 0 }
  0x19   : > { %p6717_p11 = pneg %p7145_p10  ;;  %s351_s19 = sshll.u32 %s7020_s18, 4  ;;  %s7157_s19 = int_to_ptr.vmem [resolvable:$true] %s351_s19 }
  0x1a   : > { %s379_s28 = sshll.u32 %s7021_s26, 4  ;;  %s6799_s16 = scalar_lea.hbm %s8340_s6, 16  ;;  %s7159_s28 = int_to_ptr.vmem [resolvable:$true] %s379_s28 }
  0x1b   : > { %p7153_p12 = pnand %p8351_p9, %p6717_p11  ;;  %p6800_p13 = scmp.ne.s32.totalorder %s8340_s6, %s6799_s16 }
  0x1c   : > { %p6806_p3 = scmp.lt.u32.totalorder %s6799_s16, %s8340_s6 }
  0x1d   : > { %p7169_p0 = pneg %p7153_p12 }
  0x1f   : > { %p6802_p1 = pnand %p7169_p0, %p6800_p13 }
  0x21   : > { %p6803_p2 = pneg %p6802_p1 }
  0x23   : > { %p6808_p4 = pnand %p6806_p3, %p6803_p2 }
  0x25   : > { %6811 = shalt.err (!%p6808_p4)
}
  0x26   : > { %s6812_s30 = scalar_lea.vmem %s366_s17, 16  ;;  %s6819_s23 = scalar_lea.vmem %s366_s17, 32 }
  0x27   : > { %p6813_p7 = scmp.ne.s32.totalorder %s366_s17, %s6812_s30  ;;  %p6820_p9 = scmp.lt.s32.totalorder %s366_s17, %s366_s17 }
  0x28   : > { %p6821_p6 = scmp.lt.s32.totalorder %s6819_s23, %s6812_s30 }
  0x29   : > { %p6815_p8 = pnand %p6813_p7, %p7169_p0 }
  0x2a   : > { %p6822_p5 = por %p6821_p6, %p6820_p9 }
  0x2b   : > { %p6816_p11 = pneg %p6815_p8 }
  0x2d   : > { %p6823_p10 = pnand %p6822_p5, %p6816_p11 }
  0x2f   : > { %6826 = shalt.err (!%p6823_p10)
}
  0x30   : > { %6723 = dma.hbm_to_vmem [thread:$0]  (!%p7153_p12), %s8340_s6, 16, %s366_s17, [#allocation6]  }
  0x31   : > { %s6827_s26 = scalar_lea.hbm %s8338_s4, 16 }
  0x32   : > { %p6828_p13 = scmp.ne.s32.totalorder %s8338_s4, %s6827_s26  ;;  %p6834_p5 = scmp.lt.u32.totalorder %s6827_s26, %s8338_s4 }
  0x34   : > { %p6830_p1 = pnand %p6828_p13, %p7169_p0 }
  0x36   : > { %p6831_p6 = pneg %p6830_p1 }
  0x38   : > { %p6836_p9 = pnand %p6834_p5, %p6831_p6 }
  0x3a   : > { %6839 = shalt.err (!%p6836_p9)
}
  0x3b   : > { %s6840_s17 = scalar_lea.vmem %s7157_s19, 16  ;;  %s6847_s21 = scalar_lea.vmem %s7157_s19, 32 }
  0x3c   : > { %p6841_p10 = scmp.ne.s32.totalorder %s7157_s19, %s6840_s17  ;;  %p6848_p4 = scmp.lt.s32.totalorder %s7157_s19, %s7157_s19 }
  0x3d   : > { %p6849_p7 = scmp.lt.s32.totalorder %s6847_s21, %s6840_s17 }
  0x3e   : > { %p6843_p2 = pnand %p6841_p10, %p7169_p0 }
  0x3f   : > { %p6850_p8 = por %p6849_p7, %p6848_p4 }
  0x40   : > { %p6844_p3 = pneg %p6843_p2 }
  0x42   : > { %p6851_p11 = pnand %p6850_p8, %p6844_p3 }
  0x44   : > { %6854 = shalt.err (!%p6851_p11)
}
  0x45   : > { %6720 = dma.hbm_to_vmem [thread:$0]  (!%p7153_p12), %s8338_s4, 16, %s7157_s19, [#allocation3]  }
  0x46   : > { %s6855_s16 = scalar_lea.hbm %s8342_s8, 16 }
  0x47   : > { %p6856_p13 = scmp.ne.s32.totalorder %s8342_s8, %s6855_s16  ;;  %p6862_p5 = scmp.lt.u32.totalorder %s6855_s16, %s8342_s8 }
  0x49   : > { %p6858_p1 = pnand %p6856_p13, %p7169_p0 }
  0x4b   : > { %p6859_p6 = pneg %p6858_p1 }
  0x4d   : > { %p6864_p9 = pnand %p6862_p5, %p6859_p6 }
  0x4f   : > { %6867 = shalt.err (!%p6864_p9)
}
  0x50   : > { %s6868_s19 = scalar_lea.vmem %s7159_s28, 16  ;;  %s6875_s21 = scalar_lea.vmem %s7159_s28, 32 }
  0x51   : > { %p6869_p10 = scmp.ne.s32.totalorder %s7159_s28, %s6868_s19  ;;  %p6876_p4 = scmp.lt.s32.totalorder %s7159_s28, %s7159_s28 }
  0x52   : > { %p6877_p7 = scmp.lt.s32.totalorder %s6875_s21, %s6868_s19 }
  0x53   : > { %p6871_p2 = pnand %p6869_p10, %p7169_p0 }
  0x54   : > { %p6878_p8 = por %p6877_p7, %p6876_p4 }
  0x55   : > { %p6872_p3 = pneg %p6871_p2 }
  0x57   : > { %p6879_p11 = pnand %p6878_p8, %p6872_p3 }
  0x59   : > { %6882 = shalt.err (!%p6879_p11)
}
  0x5a   : > { %6726 = dma.hbm_to_vmem [thread:$0]  (!%p7153_p12), %s8342_s8, 16, %s7159_s28, [#allocation6]  }
  0x5b   : > { %s7022_s29 = smov [#allocation8]   ;;  %s6883_s30 = scalar_lea.hbm %s8343_s9, 1024 }
  0x5c   : > { %s389_s14 = sshll.u32 %s7022_s29, 4  ;;  %p6884_p13 = scmp.ne.s32.totalorder %s8343_s9, %s6883_s30  ;;  %s390_s14 = int_to_ptr.vmem [resolvable:$true] %s389_s14 }
  0x5d   : > { %p6890_p5 = scmp.lt.u32.totalorder %s6883_s30, %s8343_s9 }
  0x5e   : > { %p6886_p1 = pnand %p6884_p13, %p7169_p0 }
  0x60   : > { %p6887_p6 = pneg %p6886_p1 }
  0x62   : > { %p6892_p9 = pnand %p6890_p5, %p6887_p6 }
  0x64   : > { %6895 = shalt.err (!%p6892_p9)
}
  0x65   : > { %s6896_s28 = scalar_lea.vmem %s390_s14, 1024  ;;  %p6904_p4 = scmp.lt.s32.totalorder %s390_s14, %s390_s14 }
  0x66   : > { %p6897_p10 = scmp.ne.s32.totalorder %s390_s14, %s6896_s28  ;;  %p6905_p7 = scmp.lt.s32.totalorder %s6896_s28, %s6896_s28 }
  0x68   : > { %p6899_p2 = pnand %p6897_p10, %p7169_p0  ;;  %p6906_p8 = por %p6905_p7, %p6904_p4 }
  0x6a   : > { %p6900_p3 = pneg %p6899_p2 }
  0x6c   : > { %p6907_p11 = pnand %p6906_p8, %p6900_p3 }
  0x6e   : > { %6910 = shalt.err (!%p6907_p11)
}
  0x6f   : > { %s7023_s24 = smov 128   ;;  %s7024_s27 = smov 8  }
  0x70   : > { %6729 = dma.hbm_to_vmem [thread:$0]  (!%p7153_p12), %s8343_s9, 1024, %s390_s14, [#allocation9], %s7023_s24, %s7023_s24, %s7024_s27  }
  0x71   : > { %p8367_p13 = scmp.ne.s32.totalorder %s8364_s15, 0 }
  0x72   : > { %p8368_p1 = scmp.eq.s32.totalorder (!%p8367_p13), %s7117_s25, 0 }
  0x73   : > { %429 = sbr.rel (%p8367_p13) target bundleno = 7328 (0x1ca0), region = 64 }
  0x7a   : > { %6984 = dma.done.wait (%p8368_p1), [#allocation3], 16   ;;  %p8369_p0 = pmov %p8368_p1 }
  0x7c   : > { %6986 = vsyncadd (%p8369_p0), [#allocation3], 4294967280  ;;  %p8370_p6 = pmov %p8369_p0 }
  0x7d   : > { %p8371_p5 = pmov %p8369_p0 }
  0x7e   : > { %6988 = dma.done.wait (%p8370_p6), [#allocation6], 32  }
  0x7f   : > { %6990 = vsyncadd (%p8371_p5), [#allocation6], 4294967264  ;;  %p8372_p9 = pmov %p8369_p0 }
  0x80   : > { %p8373_p12 = pmov %p8369_p0 }
  0x81   : > { %6992 = dma.done.wait (%p8372_p9), [#allocation9], 1024  }
  0x82   : > { %6994 = vsyncadd (%p8373_p12), [#allocation9], 4294966272  ;;  %p494_p10 = scmp.lt.s32.totalorder %s7117_s25, 1  ;;  %v7025_v0 = vmov 0   ;;  %v538_v2 = vld [vmem:[%s8339_s5] sm:$0xff]  ;;  %v539_v3 = vld [vmem:[%s8339_s5 + $0x8] sm:$0xff] }
  0x83   : > { %6788 = vset.pattern.permute.xlu0 %v7025_v0  ;;  %v6227_v5 = vpack.c.bf16 %v539_v3, %v538_v2  ;;  %v540_v6 = vld [vmem:[%s8339_s5 + $0x10] sm:$0xff]  ;;  %v541_v7 = vld [vmem:[%s8339_s5 + $0x18] sm:$0xff]  ;;  %v542_v9 = vld [vmem:[%s8339_s5 + $0x20] sm:$0xff]  ;;  %vm553_vm0 = vcmask 523264   ;;  %v7026_v56 = vmov 0.0|0.0   ;;  %vm7027_vm2 = vmmov 0  }
  0x84   : > { %s495_s15 = scalar_select %p494_p10, %s7117_s25, 1  ;;  %v6231_v8 = vpack.c.bf16 %v541_v7, %v540_v6  ;;  %v543_v10 = vld [vmem:[%s8339_s5 + $0x28] sm:$0xff]  ;;  %v544_v11 = vld [vmem:[%s8339_s5 + $0x30] sm:$0xff]  ;;  %v545_v13 = vld [vmem:[%s8339_s5 + $0x38] sm:$0xff]  ;;  %vm1015_vm3 = vcmask 64512   ;;  %vm4529_vm12 = vcmask 57344  }
  0x85   : > { %6228 = vmatprep.subr.bf16.mxu0 %v6227_v5  ;;  %v6235_v12 = vpack.c.bf16 %v543_v10, %v542_v9  ;;  %v6239_v14 = vpack.c.bf16 %v545_v13, %v544_v11  ;;  %v733_v15 = vld [vmem:[#allocation8] sm:$0xff]  ;;  %v734_v16 = vld [vmem:[#allocation8 + $0x8] sm:$0xff]  ;;  %vm7303_vm1 = vmpackc.low %vm553_vm0, %vm553_vm0  ;;  %s4970_s23 = sshll.u32 %s7117_s25, 4  ;;  %s4971_s27 = sshll.u32 %s7117_s25, 7 }
  0x86   : > { %s7267_s20 = sshll.u32 %s495_s15, 3  ;;  %6230 = vmatpush3.bf16.msra.mxu0 %v6227_v5  ;;  %v6259_v18 = vpack.c.bf16 %v734_v16, %v733_v15  ;;  %v4730_v19 = vld [vmem:[%s8337_s3] ss:$0 sm:$0xff]  ;;  %v735_v28 = vld [vmem:[#allocation8 + $0x10] sm:$0xff]  ;;  %v737_v32 = vld [vmem:[#allocation8 + $0x20] sm:$0xff]  ;;  %s8252_s24 = scalar_lea.hbm %s8345_s11, %s4970_s23 }
  0x87   : > { %s497_s26 = scalar_lea.vmem %s8334_s0, %s7267_s20  ;;  %s501_s17 = scalar_lea.vmem %s8335_s1, %s7267_s20  ;;  %6232 = vmatprep.subr.bf16.mxu0 %v6231_v8  ;;  %v4731_v20 = vld [vmem:[#allocation2] ss:$0 sm:$0xff]  ;;  %v738_v33 = vld [vmem:[#allocation8 + $0x28] sm:$0xff]  ;;  %v739_v35 = vld [vmem:[#allocation8 + $0x30] sm:$0xff] }
  0x88   : > { %v506_v1 = vld [vmem:[%s497_s26] sm:$0xff]  ;;  %v6271_v34 = vpack.c.bf16 %v738_v33, %v737_v32  ;;  %v638_v39 = vld [vmem:[%s8341_s7 + $0x8] sm:$0xff]  ;;  %v639_v41 = vld [vmem:[%s8341_s7 + $0x10] sm:$0xff]  ;;  %s505_s26 = scalar_lea.vmem %s8336_s2, %s7267_s20  ;;  %s8244_s20 = sand.u32 1, %s7009_s22  }
  0x89   : > { %511 = vperm.xlu0 %6788, %v506_v1   ;;  %v507_v4 = vld [vmem:[%s501_s17] sm:$0xff]  ;;  %v640_v42 = vld [vmem:[%s8341_s7 + $0x18] sm:$0xff]  ;;  %v642_v45 = vld [vmem:[%s8341_s7 + $0x28] sm:$0xff]  ;;  %s4726_s30 = sshll.u32 %s8244_s20, 3  ;;  %s486_s17 = scalar_lea.vmem [#allocation10], %s8244_s20 }
  0x8a   : > { %6234 = vmatpush3.bf16.msra.mxu0 %v6231_v8  ;;  %v736_v29 = vld [vmem:[#allocation8 + $0x18] sm:$0xff]  ;;  %v6247_v43 = vpack.c.bf16 %v640_v42, %v639_v41  ;;  %v643_v46 = vld [vmem:[%s8341_s7 + $0x30] sm:$0xff]  ;;  %v871_v51 = vld [vmem:[%s8344_s10 + $0x8] sm:$0xff]  ;;  %s4549_s19 = sshll.u32 %s486_s17, 4  ;;  %s8257_s29 = scalar_lea.vmem [#allocation11], %s4726_s30  ;;  %s8254_s19 = int_to_ptr.vmem [resolvable:$true] %s4549_s19 }
  0x8b   : > { %6236 = vmatprep.subr.bf16.mxu0 %v6235_v12  ;;  %v6265_v30 = vpack.c.bf16 %v736_v29, %v735_v28  ;;  %v740_v36 = vld [vmem:[#allocation8 + $0x38] sm:$0xff]  ;;  %v872_v52 = vld [vmem:[%s8344_s10 + $0x10] sm:$0xff]  ;;  %v875_v55 = vld [vmem:[%s8344_s10 + $0x28] sm:$0xff]  ;;  %s4562_s16 = sshll.u32 %s8257_s29, 4  ;;  %s4532_s15 = scalar_lea.sflag [#allocation4], %s8244_s20  ;;  %s8291_s16 = int_to_ptr.vmem [resolvable:$true] %s4562_s16 }
  0x8c   : > { %v6277_v37 = vpack.c.bf16 %v740_v36, %v739_v35  ;;  %v637_v38 = vld [vmem:[%s8341_s7] sm:$0xff]  ;;  %v644_v48 = vld [vmem:[%s8341_s7 + $0x38] sm:$0xff]  ;;  %v876_v57 = vld [vmem:[%s8344_s10 + $0x30] sm:$0xff]  ;;  %s6911_s18 = scalar_lea.vmem %s8254_s19, 16  ;;  %p8376_p3 = scmp.ne.s32.totalorder %s8361_s13, 0 }
  0x8d   : > { %516 = vperm.xlu0 %6788, %v507_v4   ;;  %v6243_v40 = vpack.c.bf16 %v638_v39, %v637_v38  ;;  %v641_v44 = vld [vmem:[%s8341_s7 + $0x20] sm:$0xff]  ;;  %v6255_v49 = vpack.c.bf16 %v644_v48, %v643_v46  ;;  %v873_v53 = vld [vmem:[%s8344_s10 + $0x18] sm:$0xff]  ;;  %p6912_p2 = scmp.ne.s32.totalorder %s8254_s19, %s6911_s18  ;;  %s7029_s14 = smov [#allocation10]  }
  0x8e   : > { %6238 = vmatpush3.bf16.msra.mxu0 %v6235_v12  ;;  %v6251_v47 = vpack.c.bf16 %v642_v45, %v641_v44  ;;  %v870_v50 = vld [vmem:[%s8344_s10] sm:$0xff]  ;;  %v877_v58 = vld [vmem:[%s8344_s10 + $0x38] sm:$0xff] }
  0x8f   : > { %6240 = vmatprep.subr.bf16.mxu0 %v6239_v14  ;;  %6244 = vmatprep.subr.bf16.mxu1 %v6243_v40  ;;  %v874_v54 = vld [vmem:[%s8344_s10 + $0x20] sm:$0xff]  ;;  %p6913_p4 = pnand %p6912_p2, %p8376_p3 }
  0x90   : > { %6246 = vmatpush3.bf16.msra.mxu1 %v6243_v40  ;;  %878 = vxpose.xlu1.b32.start [1/8] (short) (narrow) %v870_v50, 8  ;;  %v4732_v59 = vld [vmem:[#allocation5] ss:$0 sm:$0xff] }
  0x91   : > { %6248 = vmatprep.subr.bf16.mxu1 %v6247_v43  ;;  %p6914_p7 = pneg %p6913_p4 }
  0x92   : > { %6242 = vmatpush3.bf16.msra.mxu0 %v6239_v14 }
  0x93   : > { %6261 = vmatprep.subr.msk.bf16.mxu0 %vm7303_vm1, %v6259_v18 }
  0x94   : > { %6250 = vmatpush3.bf16.msra.mxu1 %v6247_v43  ;;  %879 = vxpose.xlu1.b32.cont [2/8] (short) (narrow) %v871_v51, 8 }
  0x95   : > { %6252 = vmatprep.subr.bf16.mxu1 %v6251_v47 }
  0x98   : > { %6254 = vmatpush3.bf16.msra.mxu1 %v6251_v47  ;;  %880 = vxpose.xlu1.b32.cont [3/8] (short) (narrow) %v872_v52, 8 }
  0x99   : > { %6256 = vmatprep.subr.bf16.mxu1 %v6255_v49 }
  0x9c   : > { %6258 = vmatpush3.bf16.msra.mxu1 %v6255_v49  ;;  %881 = vxpose.xlu1.b32.cont [4/8] (short) (narrow) %v873_v53, 8 }
  0x9d   : > { %6283 = vmatprep.subr.bf16.mxu1 %v7026_v56 }
  0xa0   : > { %882 = vxpose.xlu1.b32.cont [5/8] (short) (narrow) %v874_v54, 8 }
  0xa4   : > { %883 = vxpose.xlu1.b32.cont [6/8] (short) (narrow) %v875_v55, 8 }
  0xa8   : > { %884 = vxpose.xlu1.b32.cont [7/8] (short) (narrow) %v876_v57, 8 }
  0xac   : > { %885 = vxpose.xlu1.b32.end [8/8] (short) (narrow) %v877_v58, 8 }
 0x108   : > { %v512_v21 = vpop.permute.xlu0 %511 }
 0x109   : > { %v525_v22 = vmul.f32 %v4730_v19, %v512_v21 }
 0x10b   : > { %v534_v23 = vadd.f32 %v4731_v20, %v525_v22 }
 0x10c   : > { %v517_v24 = vpop.permute.xlu0 %516 }
 0x10d   : > { %6789 = vtanh.f32 %v534_v23  ;;  %v526_v25 = vmul.f32 %v4730_v19, %v517_v24 }
 0x10f   : > { %v535_v26 = vadd.f32 %v4731_v20, %v526_v25 }
 0x110   : > { %v894_v14 = vpop.trf.xlu1 }
 0x111   : > { %6791 = vtanh.f32 %v535_v26 }
 0x117   : > { %v6790_v27 = vpop.eup %6789 }
 0x118   : > { %5443 = vmatprep.mubr.msk.f32.mxu0 %vm553_vm0, %v6790_v27 }
 0x11b   : > { %v6792_v31 = vpop.eup %6791 }
 0x11c   : > { %5444 = vmatmul.mubr.msk.f32.vlgmr.msra.gmra.mrb[0].mxu0 %vm553_vm0, %v6792_v31 }
 0x11d   : > { %6264 = vmatpush3.bf16.xpose.msk.msra.mxu0 %vm7303_vm1, %v6259_v18  ;;  %5481 = vmatprep.mubr.msk.f32.mxu0 %vm553_vm0, %v733_v15  ;;  %v7028_v15 = vmov 0.0  }
 0x11e   : > { %6267 = vmatprep.subr.msk.bf16.mxu0 %vm7303_vm1, %v6265_v30 }
 0x125   : > { %6270 = vmatpush3.bf16.xpose.msk.msra.mxu0 %vm7303_vm1, %v6265_v30 }
 0x126   : > { %6273 = vmatprep.subr.msk.bf16.mxu0 %vm7303_vm1, %v6271_v34 }
 0x12d   : > { %6276 = vmatpush3.bf16.xpose.msk.msra.mxu0 %vm7303_vm1, %v6271_v34 }
 0x12e   : > { %6279 = vmatprep.subr.msk.bf16.mxu0 %vm7303_vm1, %v6277_v37 }
 0x135   : > { %6282 = vmatpush3.bf16.xpose.msk.msra.mxu0 %vm7303_vm1, %v6277_v37 }
 0x13c   : > { %5482 = vmatmul.mubr.msk.f32.vlgmr.msra.gmra.mrb[2].mxu0 %vm553_vm0, %v734_v16  ;;  %v4735_v16 = vld [vmem:[#allocation7] ss:$0 sm:$0xff] }
 0x13d   : > { %5484 = vmatprep.mubr.msk.f32.mxu0 %vm553_vm0, %v735_v28 }
 0x140   : > { %5485 = vmatmul.mubr.msk.f32.gmra.mrb[4].mxu0 %vm553_vm0, %v736_v29 }
 0x141   : > { %5487 = vmatprep.mubr.msk.f32.mxu0 %vm553_vm0, %v737_v32 }
 0x144   : > { %5488 = vmatmul.mubr.msk.f32.gmra.mrb[6].mxu0 %vm553_vm0, %v738_v33 }
 0x145   : > { %5490 = vmatprep.mubr.msk.f32.mxu0 %vm553_vm0, %v739_v35 }
 0x148   : > { %5491 = vmatmul.mubr.msk.f32.gmra.mrb[8].mxu0 %vm553_vm0, %v740_v36 }
 0x1ef   : > { %v5445_v60 = vpop.f32.mrb[0].mxu0 }
 0x1f0   : > { %v632_v61 = vadd.f32 %v5445_v60, %v4732_v59  ;;  %v626_v62 = vpop.f32.mrb[1].mxu0 }
 0x1f1   : > { %v627_v63 = vadd.f32 %v4732_v59, %v626_v62 }
 0x1f3   : > { %6793 = vtanh.f32 %v627_v63 }
 0x1f4   : > { %6795 = vtanh.f32 %v632_v61  ;;  %v1145_v61 = vld [vmem:[%s505_s26] sm:$0xff]  ;;  %s6915_s26 = sshll.u32 %s7029_s14, 4  ;;  %s6916_s26 = int_to_ptr.vmem [resolvable:$false] %s6915_s26 }
 0x1f5   : > { %s6917_s23 = scalar_lea.vmem %s6916_s26, 32  ;;  %p6918_p8 = scmp.lt.s32.totalorder %s8254_s19, %s6916_s26 }
 0x1f6   : > { %p6919_p11 = scmp.lt.s32.totalorder %s6917_s23, %s6911_s18 }
 0x1f8   : > { %p6920_p13 = por %p6919_p11, %p6918_p8 }
 0x1fa   : > { %p6921_p1 = pnand %p6920_p13, %p6914_p7 }
 0x1fd   : > { %v6794_v0 = vpop.eup %6793 }
 0x1fe   : > { %v6796_v1 = vpop.eup %6795  ;;  %5462 = vmatprep.mubr.msk.f32.mxu1 %vm553_vm0, %v6794_v0 }
 0x1ff   : > { %5463 = vmatmul.mubr.msk.f32.vlgmr.msra.gmra.mrb[0].mxu1 %vm553_vm0, %v6796_v1 }
 0x200   : > { %5509 = vmatprep.mubr.msk.f32.mxu1 %vm7027_vm2, %v7028_v15 }
 0x20f   : > { %v5483_v2 = vpop.f32.mrb[2].mxu0 }
 0x210   : > { %v831_v3 = vpop.f32.mrb[3].mxu0 }
 0x211   : > { %v6284_v4 = vpack.c.bf16 %v5483_v2, %v831_v3 }
 0x213   : > { %v5486_v5 = vpop.f32.mrb[4].mxu0  ;;  %6285 = vmatpush3.bf16.msra.mxu1 %v6284_v4 }
 0x214   : > { %v841_v6 = vpop.f32.mrb[5].mxu0  ;;  %6286 = vmatprep.subr.bf16.mxu1 %v7026_v56 }
 0x215   : > { %v6287_v7 = vpack.c.bf16 %v5486_v5, %v841_v6 }
 0x217   : > { %v7386_v8 = vpop.f32.mrb[6].mxu0  ;;  %6288 = vmatpush3.bf16.msra.mxu1 %v6287_v7 }
 0x218   : > { %v7388_v9 = vpop.f32.mrb[7].mxu0  ;;  %6289 = vmatprep.subr.bf16.mxu1 %v7026_v56 }
 0x219   : > { %v6290_v10 = vpack.c.bf16 %v7386_v8, %v7388_v9 }
 0x21b   : > { %v7392_v11 = vpop.f32.mrb[8].mxu0  ;;  %6291 = vmatpush3.bf16.msra.mxu1 %v6290_v10 }
 0x21c   : > { %v7394_v12 = vpop.f32.mrb[9].mxu0  ;;  %6292 = vmatprep.subr.bf16.mxu1 %v7026_v56 }
 0x21d   : > { %v6293_v13 = vpack.c.bf16 %v7392_v11, %v7394_v12 }
 0x21f   : > { %6294 = vmatpush3.bf16.msra.mxu1 %v6293_v13 }
 0x222   : > { %5510 = vmatmul.mubr.msk.f32.vlgmr.msra.gmra.mrb[2].mxu1 %vm553_vm0, %v894_v14 }
 0x2d2   : > { %v5464_v17 = vpop.f32.mrb[0].mxu1 }
 0x2d3   : > { %v7401_v18 = vadd.f32 %v5464_v17, %v4735_v16  ;;  %v724_v19 = vpop.f32.mrb[1].mxu1  ;;  %v1251_v17 = vlaneseq }
 0x2d4   : > { %v725_v20 = vadd.f32 %v4735_v16, %v724_v19 }
 0x2d6   : > { %983 = vxpose.xlu0.b32.start.end [1/1] (short) (narrow) %v725_v20, 64  ;;  %5512 = vmatprep.subr.mxu1 %v725_v20 }
 0x2d7   : > { %5513 = vmatpush3.msra.mxu1 %v725_v20 }
 0x2d8   : > { %5526 = vmatprep.subr.mxu1 %v7028_v15 }
 0x356   : > { %v999_v21 = vpop.trf.xlu0 }
 0x357   : > { %5514 = vmatprep.mubr.msk.f32.mxu1 %vm1015_vm3, %v999_v21  ;;  %v1252_v21 = vshrl.u32 %v1251_v17, 7 }
 0x35a   : > { %v1000_v22 = vpop.trf.xlu0 }
 0x35b   : > { %5515 = vmatmul.mubr.msk.f32.vlgmr.msra.gmra.mrb[4].mxu1 %vm1015_vm3, %v1000_v22 }
 0x35c   : > { %5527 = vmatpush3.msra.mxu1 %v725_v20 }
 0x35e   : > { %v1001_v23 = vpop.trf.xlu0 }
 0x35f   : > { %5517 = vmatprep.mubr.msk.f32.mxu1 %vm1015_vm3, %v1001_v23  ;;  %v1253_v23 = vadd.s32 8, %v1252_v21 }
 0x362   : > { %v1002_v24 = vpop.trf.xlu0 }
 0x363   : > { %5518 = vmatmul.mubr.msk.f32.gmra.mrb[6].mxu1 %vm1015_vm3, %v1002_v24  ;;  %v1261_v24 = vand.u32 127, %v1251_v17 }
 0x365   : > { %vm1262_vm4 = vcmp.eq.s32.totalorder %v1252_v21, %v1261_v24  ;;  %vm1263_vm5 = vcmp.eq.s32.totalorder %v1253_v23, %v1261_v24 }
 0x366   : > { %v1003_v25 = vpop.trf.xlu0 }
 0x367   : > { %5520 = vmatprep.mubr.msk.f32.mxu1 %vm1015_vm3, %v1003_v25  ;;  %v1254_v25 = vadd.s32 16, %v1252_v21 }
 0x369   : > { %vm1264_vm6 = vcmp.eq.s32.totalorder %v1254_v25, %v1261_v24 }
 0x36a   : > { %v1004_v26 = vpop.trf.xlu0 }
 0x36b   : > { %5521 = vmatmul.mubr.msk.f32.gmra.mrb[8].mxu1 %vm1015_vm3, %v1004_v26  ;;  %v1255_v26 = vadd.s32 24, %v1252_v21 }
 0x36d   : > { %vm1265_vm7 = vcmp.eq.s32.totalorder %v1255_v26, %v1261_v24 }
 0x36e   : > { %v1005_v27 = vpop.trf.xlu0 }
 0x36f   : > { %5523 = vmatprep.mubr.msk.f32.mxu1 %vm1015_vm3, %v1005_v27  ;;  %v1256_v27 = vadd.s32 32, %v1252_v21 }
 0x371   : > { %vm1266_vm8 = vcmp.eq.s32.totalorder %v1256_v27, %v1261_v24 }
 0x372   : > { %v1006_v28 = vpop.trf.xlu0 }
 0x373   : > { %5524 = vmatmul.mubr.msk.f32.gmra.mrb[10].mxu1 %vm1015_vm3, %v1006_v28  ;;  %v1257_v28 = vadd.s32 40, %v1252_v21 }
 0x374   : > { %5528 = vmatprep.mubr.msk.f32.mxu1 %vm7027_vm2, %v7028_v15 }
 0x375   : > { %vm1267_vm9 = vcmp.eq.s32.totalorder %v1257_v28, %v1261_v24 }
 0x42e   : > { %v5516_v29 = vpop.f32.mrb[4].mxu1 }
 0x42f   : > { %v7414_v30 = vadd.f32 %v5516_v29, %v5483_v2  ;;  %v1106_v31 = vpop.f32.mrb[5].mxu1  ;;  %v4764_v29 = vsel %vm1262_vm4, 1.0, %v7028_v15 }
 0x430   : > { %v7416_v32 = vadd.f32 %v1106_v31, %v831_v3  ;;  %v4765_v31 = vsel %vm1263_vm5, 1.0, %v7028_v15 }
 0x431   : > { %v1287_v33 = vand.u32 2147483647, %v7414_v30 }
 0x432   : > { %5547 = vmatprep.mubr.msk.f32.mxu0 %vm553_vm0, %v7416_v32  ;;  %v1286_v34 = vand.u32 2147483647, %v7416_v32 }
 0x433   : > { %v1297_v35 = vsel %vm553_vm0, %v1287_v33, 0.0  ;;  %v4766_v33 = vsel %vm1264_vm6, 1.0, %v7028_v15 }
 0x434   : > { %1298 = vadd.xlane.f32.xlu0 %v1297_v35  ;;  %v1294_v36 = vsel %vm553_vm0, %v1286_v34, 0.0  ;;  %v4767_v34 = vsel %vm1265_vm7, 1.0, %v7028_v15  ;;  %v1258_v35 = vadd.s32 48, %v1252_v21 }
 0x435   : > { %1295 = vadd.xlane.f32.xlu1 %v1294_v36  ;;  %v1259_v36 = vadd.s32 56, %v1252_v21 }
 0x436   : > { %v5519_v37 = vpop.f32.mrb[6].mxu1  ;;  %vm1268_vm10 = vcmp.eq.s32.totalorder %v1258_v35, %v1261_v24 }
 0x437   : > { %v7424_v38 = vadd.f32 %v5519_v37, %v5486_v5  ;;  %v1116_v39 = vpop.f32.mrb[7].mxu1  ;;  %vm1269_vm11 = vcmp.eq.s32.totalorder %v1259_v36, %v1261_v24 }
 0x438   : > { %v7426_v40 = vadd.f32 %v1116_v39, %v841_v6 }
 0x439   : > { %v1289_v41 = vand.u32 2147483647, %v7424_v38 }
 0x43a   : > { %v1288_v43 = vand.u32 2147483647, %v7426_v40 }
 0x43b   : > { %v1303_v42 = vsel %vm553_vm0, %v1289_v41, 0.0 }
 0x43c   : > { %1304 = vadd.xlane.f32.xlu1 %v1303_v42  ;;  %v1300_v47 = vsel %vm553_vm0, %v1288_v43, 0.0 }
 0x43e   : > { %v5522_v44 = vpop.f32.mrb[8].mxu1 }
 0x43f   : > { %v7432_v45 = vadd.f32 %v5522_v44, %v7386_v8  ;;  %v1126_v46 = vpop.f32.mrb[9].mxu1  ;;  %v4768_v44 = vsel %vm1266_vm8, 1.0, %v7028_v15 }
 0x440   : > { %v7436_v48 = vadd.f32 %v1126_v46, %v7388_v9  ;;  %1301 = vadd.xlane.f32.xlu1 %v1300_v47  ;;  %v4769_v46 = vsel %vm1267_vm9, 1.0, %v7028_v15 }
 0x441   : > { %v1291_v49 = vand.u32 2147483647, %v7432_v45 }
 0x442   : > { %v1290_v51 = vand.u32 2147483647, %v7436_v48 }
 0x443   : > { %v1309_v50 = vsel %vm553_vm0, %v1291_v49, 0.0 }
 0x444   : > { %1310 = vadd.xlane.f32.xlu1 %v1309_v50  ;;  %v1306_v55 = vsel %vm553_vm0, %v1290_v51, 0.0 }
 0x446   : > { %v5525_v52 = vpop.f32.mrb[10].mxu1 }
 0x447   : > { %v7442_v53 = vadd.f32 %v5525_v52, %v7392_v11  ;;  %v1136_v54 = vpop.f32.mrb[11].mxu1  ;;  %v4770_v52 = vsel %vm1268_vm10, 1.0, %v7028_v15 }
 0x448   : > { %v7446_v56 = vadd.f32 %v1136_v54, %v7394_v12  ;;  %1307 = vadd.xlane.f32.xlu1 %v1306_v55  ;;  %v4771_v54 = vsel %vm1269_vm11, 1.0, %v7028_v15 }
 0x449   : > { %v1293_v59 = vand.u32 2147483647, %v7442_v53 }
 0x44a   : > { %v1292_v57 = vand.u32 2147483647, %v7446_v56 }
 0x44b   : > { %v1315_v60 = vsel %vm553_vm0, %v1293_v59, 0.0 }
 0x44c   : > { %v1312_v58 = vsel %vm553_vm0, %v1292_v57, 0.0 }
 0x44d   : > { %1313 = vadd.xlane.f32.xlu1 %v1312_v58 }
 0x451   : > { %1316 = vadd.xlane.f32.xlu1 %v1315_v60 }
 0x484   : > { %1146 = vxpose.xlu1.b32.start.end [1/1] (short) (narrow) %v1145_v61, 8 }
 0x4c1   : > { %v1299_v5 = vpop.xlane.xlu0 %1298 }
 0x4c2   : > { %v1296_v62 = vpop.xlane.xlu1 %1295 }
 0x4c9   : > { %v1305_v63 = vpop.xlane.xlu1 %1304 }
 0x4cd   : > { %v1302_v0 = vpop.xlane.xlu1 %1301 }
 0x4d1   : > { %v1311_v1 = vpop.xlane.xlu1 %1310 }
 0x4d2   : > { %v1319_v7 = vmax.f32 %v1299_v5, %v1311_v1 }
 0x4d5   : > { %v1308_v2 = vpop.xlane.xlu1 %1307 }
 0x4d6   : > { %v1318_v4 = vmax.f32 %v1296_v62, %v1308_v2 }
 0x4d8   : > { %v1322_v10 = vmax.f32 %v1318_v4, %v1319_v7 }
 0x4da   : > { %v1314_v3 = vpop.xlane.xlu1 %1313 }
 0x4db   : > { %v1320_v8 = vmax.f32 %v1302_v0, %v1314_v3 }
 0x4de   : > { %v1317_v6 = vpop.xlane.xlu1 %1316 }
 0x4df   : > { %v1321_v9 = vmax.f32 %v1305_v63, %v1317_v6 }
 0x4e1   : > { %v1323_v11 = vmax.f32 %v1320_v8, %v1321_v9 }
 0x4e3   : > { %v1324_v12 = vmax.f32 %v1322_v10, %v1323_v11 }
 0x4e5   : > { %v1325_v13 = vrot.slane %v1324_v12, 4 }
 0x4e7   : > { %v1326_v14 = vmax.f32 %v1324_v12, %v1325_v13 }
 0x4e9   : > { %v1327_v16 = vrot.slane %v1326_v14, 2 }
 0x4eb   : > { %v1328_v19 = vmax.f32 %v1326_v14, %v1327_v16 }
 0x4ed   : > { %v1329_v20 = vrot.slane %v1328_v19, 1 }
 0x4ef   : > { %v1330_v22 = vmax.f32 %v1328_v19, %v1329_v20 }
 0x4f1   : > { %6797 = vrcp.f32 %v1330_v22 }
 0x4fb   : > { %v6798_v37 = vpop.eup %6797 }
 0x4fc   : > { %v7460_v39 = vmul.f32 %v6798_v37, %v4764_v29  ;;  %v7462_v41 = vmul.f32 %v6798_v37, %v4765_v31  ;;  %v7464_v42 = vmul.f32 %v6798_v37, %v4766_v33  ;;  %v7466_v43 = vmul.f32 %v6798_v37, %v4767_v34 }
 0x4fd   : > { %v7474_v50 = vmul.f32 %v6798_v37, %v4768_v44  ;;  %v7476_v51 = vmul.f32 %v6798_v37, %v4769_v46  ;;  %v7482_v58 = vmul.f32 %v6798_v37, %v4770_v52  ;;  %v7484_v59 = vmul.f32 %v6798_v37, %v4771_v54 }
 0x4fe   : > { %v6295_v47 = vpack.c.bf16 %v7462_v41, %v7460_v39  ;;  %v6299_v49 = vpack.c.bf16 %v7466_v43, %v7464_v42  ;;  %v1470_v10 = vmul.f32 2.0, %v7462_v41  ;;  %v1469_v12 = vmul.f32 2.0, %v7460_v39 }
 0x4ff   : > { %v6303_v57 = vpack.c.bf16 %v7476_v51, %v7474_v50  ;;  %v6307_v60 = vpack.c.bf16 %v7484_v59, %v7482_v58  ;;  %v1472_v17 = vmul.f32 2.0, %v7466_v43  ;;  %v1471_v20 = vmul.f32 2.0, %v7464_v42 }
 0x500   : > { %6296 = vmatprep.subr.bf16.mxu0 %v6295_v47  ;;  %v1474_v25 = vmul.f32 2.0, %v7476_v51  ;;  %v1473_v27 = vmul.f32 2.0, %v7474_v50  ;;  %v1476_v34 = vmul.f32 2.0, %v7484_v59  ;;  %v1475_v36 = vmul.f32 2.0, %v7482_v58 }
 0x501   : > { %6298 = vmatpush3.bf16.msra.mxu0 %v6295_v47 }
 0x502   : > { %6300 = vmatprep.subr.bf16.mxu0 %v6299_v49 }
 0x504   : > { %v1162_v55 = vpop.trf.xlu1 }
 0x505   : > { %5529 = vmatmul.mubr.msk.f32.vlgmr.msra.gmra.mrb[2].mxu1 %vm1015_vm3, %v1162_v55  ;;  %6302 = vmatpush3.bf16.msra.mxu0 %v6299_v49 }
 0x506   : > { %6304 = vmatprep.subr.bf16.mxu0 %v6303_v57  ;;  %5575 = vmatprep.mubr.msk.f32.mxu1 %vm553_vm0, %v7460_v39 }
 0x509   : > { %6306 = vmatpush3.bf16.msra.mxu0 %v6303_v57 }
 0x50a   : > { %6308 = vmatprep.subr.bf16.mxu0 %v6307_v60 }
 0x50d   : > { %6310 = vmatpush3.bf16.msra.mxu0 %v6307_v60 }
 0x510   : > { %5548 = vmatmul.mubr.msk.f32.vlgmr.msra.gmra.mrb[10].mxu0 %vm553_vm0, %v7414_v30 }
 0x511   : > { %5550 = vmatprep.mubr.msk.f32.mxu0 %vm553_vm0, %v7426_v40 }
 0x514   : > { %5551 = vmatmul.mubr.msk.f32.gmra.mrb[12].mxu0 %vm553_vm0, %v7424_v38 }
 0x515   : > { %5553 = vmatprep.mubr.msk.f32.mxu0 %vm553_vm0, %v7436_v48 }
 0x518   : > { %5554 = vmatmul.mubr.msk.f32.gmra.mrb[14].mxu0 %vm553_vm0, %v7432_v45 }
 0x519   : > { %5556 = vmatprep.mubr.msk.f32.mxu0 %vm553_vm0, %v7446_v56 }
 0x51c   : > { %5557 = vmatmul.mubr.msk.f32.gmra.mrb[16].mxu0 %vm553_vm0, %v7442_v53 }
 0x51d   : > { %5603 = vmatprep.mubr.msk.f32.mxu0 %vm553_vm0, %v7416_v32 }
 0x5d8   : > { %v7507_v15 = vpop.f32.mrb[2].mxu1 }
 0x5d9   : > { %v5530_v61 = vpop.f32.mrb[3].mxu1 }
 0x5e3   : > { %v5549_v62 = vpop.f32.mrb[10].mxu0 }
 0x5e4   : > { %v1430_v63 = vpop.f32.mrb[11].mxu0 }
 0x5e5   : > { %v6311_v0 = vpack.c.bf16 %v5549_v62, %v1430_v63 }
 0x5e7   : > { %v5552_v1 = vpop.f32.mrb[12].mxu0  ;;  %6312 = vmatprep.subr.bf16.mxu1 %v6311_v0 }
 0x5e8   : > { %v1440_v2 = vpop.f32.mrb[13].mxu0  ;;  %6314 = vmatpush3.bf16.msra.mxu1 %v6311_v0 }
 0x5e9   : > { %v6315_v3 = vpack.c.bf16 %v5552_v1, %v1440_v2 }
 0x5eb   : > { %v5555_v4 = vpop.f32.mrb[14].mxu0  ;;  %6316 = vmatprep.subr.bf16.mxu1 %v6315_v3 }
 0x5ec   : > { %v1450_v5 = vpop.f32.mrb[15].mxu0  ;;  %6318 = vmatpush3.bf16.msra.mxu1 %v6315_v3 }
 0x5ed   : > { %v6319_v6 = vpack.c.bf16 %v5555_v4, %v1450_v5 }
 0x5ef   : > { %v5558_v7 = vpop.f32.mrb[16].mxu0  ;;  %6320 = vmatprep.subr.bf16.mxu1 %v6319_v6 }
 0x5f0   : > { %v1460_v8 = vpop.f32.mrb[17].mxu0  ;;  %6322 = vmatpush3.bf16.msra.mxu1 %v6319_v6 }
 0x5f1   : > { %v6323_v9 = vpack.c.bf16 %v5558_v7, %v1460_v8 }
 0x5f3   : > { %6324 = vmatprep.subr.bf16.mxu1 %v6323_v9 }
 0x5f4   : > { %6326 = vmatpush3.bf16.msra.mxu1 %v6323_v9 }
 0x5f7   : > { %5576 = vmatmul.mubr.msk.f32.vlgmr.msra.gmra.mrb[12].mxu1 %vm553_vm0, %v7462_v41 }
 0x5f8   : > { %5578 = vmatprep.mubr.msk.f32.mxu1 %vm553_vm0, %v7464_v42 }
 0x5fb   : > { %5579 = vmatmul.mubr.msk.f32.gmra.mrb[14].mxu1 %vm553_vm0, %v7466_v43 }
 0x5fc   : > { %5581 = vmatprep.mubr.msk.f32.mxu1 %vm553_vm0, %v7474_v50 }
 0x5ff   : > { %5582 = vmatmul.mubr.msk.f32.gmra.mrb[16].mxu1 %vm553_vm0, %v7476_v51 }
 0x600   : > { %5584 = vmatprep.mubr.msk.f32.mxu1 %vm553_vm0, %v7482_v58 }
 0x603   : > { %5585 = vmatmul.mubr.msk.f32.gmra.mrb[18].mxu1 %vm553_vm0, %v7484_v59 }
 0x6ca   : > { %v5577_v11 = vpop.f32.mrb[12].mxu1 }
 0x6cb   : > { %v7525_v13 = vsub.f32 %v1470_v10, %v5577_v11  ;;  %v1567_v14 = vpop.f32.mrb[13].mxu1 }
 0x6cc   : > { %v7527_v16 = vsub.f32 %v1469_v12, %v1567_v14 }
 0x6cd   : > { %v1720_v60 = vmul.f32 2.0, %v7525_v13 }
 0x6ce   : > { %v5580_v19 = vpop.f32.mrb[14].mxu1  ;;  %5631 = vmatprep.mubr.msk.f32.mxu1 %vm553_vm0, %v7527_v16  ;;  %v6327_v21 = vpack.c.bf16 %v7525_v13, %v7527_v16  ;;  %v1719_v62 = vmul.f32 2.0, %v7527_v16 }
 0x6cf   : > { %v7535_v22 = vsub.f32 %v1472_v17, %v5580_v19  ;;  %v1577_v23 = vpop.f32.mrb[15].mxu1 }
 0x6d0   : > { %v7537_v24 = vsub.f32 %v1471_v20, %v1577_v23  ;;  %6328 = vmatprep.subr.bf16.mxu0 %v6327_v21 }
 0x6d1   : > { %6330 = vmatpush3.bf16.msra.mxu0 %v6327_v21  ;;  %v1722_v2 = vmul.f32 2.0, %v7535_v22 }
 0x6d2   : > { %v5583_v26 = vpop.f32.mrb[16].mxu1  ;;  %v6331_v28 = vpack.c.bf16 %v7535_v22, %v7537_v24  ;;  %v1721_v4 = vmul.f32 2.0, %v7537_v24 }
 0x6d3   : > { %v7543_v29 = vsub.f32 %v1474_v25, %v5583_v26  ;;  %v1587_v31 = vpop.f32.mrb[17].mxu1 }
 0x6d4   : > { %v7545_v33 = vsub.f32 %v1473_v27, %v1587_v31  ;;  %6332 = vmatprep.subr.bf16.mxu0 %v6331_v28 }
 0x6d5   : > { %6334 = vmatpush3.bf16.msra.mxu0 %v6331_v28  ;;  %v1724_v9 = vmul.f32 2.0, %v7543_v29 }
 0x6d6   : > { %v5586_v35 = vpop.f32.mrb[18].mxu1  ;;  %v6335_v37 = vpack.c.bf16 %v7543_v29, %v7545_v33  ;;  %v1723_v11 = vmul.f32 2.0, %v7545_v33 }
 0x6d7   : > { %v7551_v39 = vsub.f32 %v1476_v34, %v5586_v35  ;;  %v1597_v41 = vpop.f32.mrb[19].mxu1 }
 0x6d8   : > { %v7553_v42 = vsub.f32 %v1475_v36, %v1597_v41  ;;  %6336 = vmatprep.subr.bf16.mxu0 %v6335_v37 }
 0x6d9   : > { %6338 = vmatpush3.bf16.msra.mxu0 %v6335_v37  ;;  %v1726_v17 = vmul.f32 2.0, %v7551_v39 }
 0x6da   : > { %v6339_v43 = vpack.c.bf16 %v7551_v39, %v7553_v42  ;;  %v1725_v20 = vmul.f32 2.0, %v7553_v42 }
 0x6dc   : > { %6340 = vmatprep.subr.bf16.mxu0 %v6339_v43 }
 0x6dd   : > { %6342 = vmatpush3.bf16.msra.mxu0 %v6339_v43 }
 0x6e0   : > { %5604 = vmatmul.mubr.msk.f32.vlgmr.msra.gmra.mrb[18].mxu0 %vm553_vm0, %v7414_v30 }
 0x6e1   : > { %5606 = vmatprep.mubr.msk.f32.mxu0 %vm553_vm0, %v7426_v40 }
 0x6e4   : > { %5607 = vmatmul.mubr.msk.f32.gmra.mrb[20].mxu0 %vm553_vm0, %v7424_v38 }
 0x6e5   : > { %5609 = vmatprep.mubr.msk.f32.mxu0 %vm553_vm0, %v7436_v48 }
 0x6e8   : > { %5610 = vmatmul.mubr.msk.f32.gmra.mrb[22].mxu0 %vm553_vm0, %v7432_v45 }
 0x6e9   : > { %5612 = vmatprep.mubr.msk.f32.mxu0 %vm553_vm0, %v7446_v56 }
 0x6ec   : > { %5613 = vmatmul.mubr.msk.f32.gmra.mrb[24].mxu0 %vm553_vm0, %v7442_v53 }
 0x6ed   : > { %5659 = vmatprep.mubr.msk.f32.mxu0 %vm553_vm0, %v7416_v32 }
 0x7b3   : > { %v5605_v44 = vpop.f32.mrb[18].mxu0 }
 0x7b4   : > { %v1680_v46 = vpop.f32.mrb[19].mxu0 }
 0x7b5   : > { %v6343_v47 = vpack.c.bf16 %v5605_v44, %v1680_v46 }
 0x7b7   : > { %v5608_v49 = vpop.f32.mrb[20].mxu0  ;;  %6344 = vmatprep.subr.bf16.mxu1 %v6343_v47 }
 0x7b8   : > { %v1690_v50 = vpop.f32.mrb[21].mxu0  ;;  %6346 = vmatpush3.bf16.msra.mxu1 %v6343_v47 }
 0x7b9   : > { %v6347_v51 = vpack.c.bf16 %v5608_v49, %v1690_v50 }
 0x7bb   : > { %v5611_v52 = vpop.f32.mrb[22].mxu0  ;;  %6348 = vmatprep.subr.bf16.mxu1 %v6347_v51 }
 0x7bc   : > { %v1700_v54 = vpop.f32.mrb[23].mxu0  ;;  %6350 = vmatpush3.bf16.msra.mxu1 %v6347_v51 }
 0x7bd   : > { %v6351_v55 = vpack.c.bf16 %v5611_v52, %v1700_v54 }
 0x7bf   : > { %v5614_v57 = vpop.f32.mrb[24].mxu0  ;;  %6352 = vmatprep.subr.bf16.mxu1 %v6351_v55 }
 0x7c0   : > { %v1710_v58 = vpop.f32.mrb[25].mxu0  ;;  %6354 = vmatpush3.bf16.msra.mxu1 %v6351_v55 }
 0x7c1   : > { %v6355_v59 = vpack.c.bf16 %v5614_v57, %v1710_v58 }
 0x7c3   : > { %6356 = vmatprep.subr.bf16.mxu1 %v6355_v59 }
 0x7c4   : > { %6358 = vmatpush3.bf16.msra.mxu1 %v6355_v59 }
 0x7c7   : > { %5632 = vmatmul.mubr.msk.f32.vlgmr.msra.gmra.mrb[20].mxu1 %vm553_vm0, %v7525_v13 }
 0x7c8   : > { %5634 = vmatprep.mubr.msk.f32.mxu1 %vm553_vm0, %v7537_v24 }
 0x7cb   : > { %5635 = vmatmul.mubr.msk.f32.gmra.mrb[22].mxu1 %vm553_vm0, %v7535_v22 }
 0x7cc   : > { %5637 = vmatprep.mubr.msk.f32.mxu1 %vm553_vm0, %v7545_v33 }
 0x7cf   : > { %5638 = vmatmul.mubr.msk.f32.gmra.mrb[24].mxu1 %vm553_vm0, %v7543_v29 }
 0x7d0   : > { %5640 = vmatprep.mubr.msk.f32.mxu1 %vm553_vm0, %v7553_v42 }
 0x7d3   : > { %5641 = vmatmul.mubr.msk.f32.gmra.mrb[26].mxu1 %vm553_vm0, %v7551_v39 }
 0x89a   : > { %v5633_v61 = vpop.f32.mrb[20].mxu1 }
 0x89b   : > { %v7589_v63 = vsub.f32 %v1720_v60, %v5633_v61  ;;  %v1817_v0 = vpop.f32.mrb[21].mxu1 }
 0x89c   : > { %v7591_v1 = vsub.f32 %v1719_v62, %v1817_v0 }
 0x89d   : > { %v1970_v42 = vmul.f32 2.0, %v7589_v63 }
 0x89e   : > { %v5636_v3 = vpop.f32.mrb[22].mxu1  ;;  %5687 = vmatprep.mubr.msk.f32.mxu1 %vm553_vm0, %v7591_v1  ;;  %v6359_v5 = vpack.c.bf16 %v7589_v63, %v7591_v1  ;;  %v1969_v44 = vmul.f32 2.0, %v7591_v1 }
 0x89f   : > { %v7599_v6 = vsub.f32 %v1722_v2, %v5636_v3  ;;  %v1827_v7 = vpop.f32.mrb[23].mxu1 }
 0x8a0   : > { %v7601_v8 = vsub.f32 %v1721_v4, %v1827_v7  ;;  %6360 = vmatprep.subr.bf16.mxu0 %v6359_v5 }
 0x8a1   : > { %6362 = vmatpush3.bf16.msra.mxu0 %v6359_v5  ;;  %v1972_v50 = vmul.f32 2.0, %v7599_v6 }
 0x8a2   : > { %v5639_v10 = vpop.f32.mrb[24].mxu1  ;;  %v6363_v12 = vpack.c.bf16 %v7599_v6, %v7601_v8  ;;  %v1971_v52 = vmul.f32 2.0, %v7601_v8 }
 0x8a3   : > { %v7607_v13 = vsub.f32 %v1724_v9, %v5639_v10  ;;  %v1837_v14 = vpop.f32.mrb[25].mxu1 }
 0x8a4   : > { %v7609_v16 = vsub.f32 %v1723_v11, %v1837_v14  ;;  %6364 = vmatprep.subr.bf16.mxu0 %v6363_v12 }
 0x8a5   : > { %6366 = vmatpush3.bf16.msra.mxu0 %v6363_v12  ;;  %v1974_v59 = vmul.f32 2.0, %v7607_v13 }
 0x8a6   : > { %v5642_v19 = vpop.f32.mrb[26].mxu1  ;;  %v6367_v21 = vpack.c.bf16 %v7607_v13, %v7609_v16  ;;  %v1973_v61 = vmul.f32 2.0, %v7609_v16 }
 0x8a7   : > { %v7615_v22 = vsub.f32 %v1726_v17, %v5642_v19  ;;  %v1847_v23 = vpop.f32.mrb[27].mxu1 }
 0x8a8   : > { %v7617_v24 = vsub.f32 %v1725_v20, %v1847_v23  ;;  %6368 = vmatprep.subr.bf16.mxu0 %v6367_v21 }
 0x8a9   : > { %6370 = vmatpush3.bf16.msra.mxu0 %v6367_v21  ;;  %v1976_v2 = vmul.f32 2.0, %v7615_v22 }
 0x8aa   : > { %v6371_v25 = vpack.c.bf16 %v7615_v22, %v7617_v24  ;;  %v1975_v4 = vmul.f32 2.0, %v7617_v24 }
 0x8ac   : > { %6372 = vmatprep.subr.bf16.mxu0 %v6371_v25 }
 0x8ad   : > { %6374 = vmatpush3.bf16.msra.mxu0 %v6371_v25 }
 0x8b0   : > { %5660 = vmatmul.mubr.msk.f32.vlgmr.msra.gmra.mrb[26].mxu0 %vm553_vm0, %v7414_v30 }
 0x8b1   : > { %5662 = vmatprep.mubr.msk.f32.mxu0 %vm553_vm0, %v7426_v40 }
 0x8b4   : > { %5663 = vmatmul.mubr.msk.f32.gmra.mrb[28].mxu0 %vm553_vm0, %v7424_v38 }
 0x8b5   : > { %5665 = vmatprep.mubr.msk.f32.mxu0 %vm553_vm0, %v7436_v48 }
 0x8b8   : > { %5666 = vmatmul.mubr.msk.f32.gmra.mrb[30].mxu0 %vm553_vm0, %v7432_v45 }
 0x8b9   : > { %5668 = vmatprep.mubr.msk.f32.mxu0 %vm553_vm0, %v7446_v56 }
 0x8bc   : > { %5669 = vmatmul.mubr.msk.f32.gmra.mrb[32].mxu0 %vm553_vm0, %v7442_v53 }
 0x8bd   : > { %5715 = vmatprep.mubr.msk.f32.mxu0 %vm553_vm0, %v7416_v32 }
 0x983   : > { %v5661_v26 = vpop.f32.mrb[26].mxu0 }
 0x984   : > { %v1930_v27 = vpop.f32.mrb[27].mxu0 }
 0x985   : > { %v6375_v28 = vpack.c.bf16 %v5661_v26, %v1930_v27 }
 0x987   : > { %v5664_v29 = vpop.f32.mrb[28].mxu0  ;;  %6376 = vmatprep.subr.bf16.mxu1 %v6375_v28 }
 0x988   : > { %v1940_v31 = vpop.f32.mrb[29].mxu0  ;;  %6378 = vmatpush3.bf16.msra.mxu1 %v6375_v28 }
 0x989   : > { %v6379_v33 = vpack.c.bf16 %v5664_v29, %v1940_v31 }
 0x98b   : > { %v5667_v34 = vpop.f32.mrb[30].mxu0  ;;  %6380 = vmatprep.subr.bf16.mxu1 %v6379_v33 }
 0x98c   : > { %v1950_v35 = vpop.f32.mrb[31].mxu0  ;;  %6382 = vmatpush3.bf16.msra.mxu1 %v6379_v33 }
 0x98d   : > { %v6383_v36 = vpack.c.bf16 %v5667_v34, %v1950_v35 }
 0x98f   : > { %v5670_v37 = vpop.f32.mrb[32].mxu0  ;;  %6384 = vmatprep.subr.bf16.mxu1 %v6383_v36 }
 0x990   : > { %v1960_v39 = vpop.f32.mrb[33].mxu0  ;;  %6386 = vmatpush3.bf16.msra.mxu1 %v6383_v36 }
 0x991   : > { %v6387_v41 = vpack.c.bf16 %v5670_v37, %v1960_v39 }
 0x993   : > { %6388 = vmatprep.subr.bf16.mxu1 %v6387_v41 }
 0x994   : > { %6390 = vmatpush3.bf16.msra.mxu1 %v6387_v41 }
 0x997   : > { %5688 = vmatmul.mubr.msk.f32.vlgmr.msra.gmra.mrb[28].mxu1 %vm553_vm0, %v7589_v63 }
 0x998   : > { %5690 = vmatprep.mubr.msk.f32.mxu1 %vm553_vm0, %v7601_v8 }
 0x99b   : > { %5691 = vmatmul.mubr.msk.f32.gmra.mrb[30].mxu1 %vm553_vm0, %v7599_v6 }
 0x99c   : > { %5693 = vmatprep.mubr.msk.f32.mxu1 %vm553_vm0, %v7609_v16 }
 0x99f   : > { %5694 = vmatmul.mubr.msk.f32.gmra.mrb[32].mxu1 %vm553_vm0, %v7607_v13 }
 0x9a0   : > { %5696 = vmatprep.mubr.msk.f32.mxu1 %vm553_vm0, %v7617_v24 }
 0x9a3   : > { %5697 = vmatmul.mubr.msk.f32.gmra.mrb[34].mxu1 %vm553_vm0, %v7615_v22 }
 0xa6a   : > { %v5689_v43 = vpop.f32.mrb[28].mxu1 }
 0xa6b   : > { %v7653_v46 = vsub.f32 %v1970_v42, %v5689_v43  ;;  %v2067_v47 = vpop.f32.mrb[29].mxu1 }
 0xa6c   : > { %v7655_v49 = vsub.f32 %v1969_v44, %v2067_v47 }
 0xa6d   : > { %v2220_v24 = vmul.f32 2.0, %v7653_v46 }
 0xa6e   : > { %v5692_v51 = vpop.f32.mrb[30].mxu1  ;;  %5743 = vmatprep.mubr.msk.f32.mxu1 %vm553_vm0, %v7655_v49  ;;  %v6391_v54 = vpack.c.bf16 %v7653_v46, %v7655_v49  ;;  %v2219_v26 = vmul.f32 2.0, %v7655_v49 }
 0xa6f   : > { %v7663_v55 = vsub.f32 %v1972_v50, %v5692_v51  ;;  %v2077_v57 = vpop.f32.mrb[31].mxu1 }
 0xa70   : > { %v7665_v58 = vsub.f32 %v1971_v52, %v2077_v57  ;;  %6392 = vmatprep.subr.bf16.mxu0 %v6391_v54 }
 0xa71   : > { %6394 = vmatpush3.bf16.msra.mxu0 %v6391_v54  ;;  %v2222_v31 = vmul.f32 2.0, %v7663_v55 }
 0xa72   : > { %v5695_v60 = vpop.f32.mrb[32].mxu1  ;;  %v6395_v62 = vpack.c.bf16 %v7663_v55, %v7665_v58  ;;  %v2221_v34 = vmul.f32 2.0, %v7665_v58 }
 0xa73   : > { %v7671_v63 = vsub.f32 %v1974_v59, %v5695_v60  ;;  %v2087_v0 = vpop.f32.mrb[33].mxu1 }
 0xa74   : > { %v7673_v1 = vsub.f32 %v1973_v61, %v2087_v0  ;;  %6396 = vmatprep.subr.bf16.mxu0 %v6395_v62 }
 0xa75   : > { %6398 = vmatpush3.bf16.msra.mxu0 %v6395_v62  ;;  %v2224_v41 = vmul.f32 2.0, %v7671_v63 }
 0xa76   : > { %v5698_v3 = vpop.f32.mrb[34].mxu1  ;;  %v6399_v5 = vpack.c.bf16 %v7671_v63, %v7673_v1  ;;  %v2223_v43 = vmul.f32 2.0, %v7673_v1 }
 0xa77   : > { %v7679_v6 = vsub.f32 %v1976_v2, %v5698_v3  ;;  %v2097_v7 = vpop.f32.mrb[35].mxu1 }
 0xa78   : > { %v7681_v8 = vsub.f32 %v1975_v4, %v2097_v7  ;;  %6400 = vmatprep.subr.bf16.mxu0 %v6399_v5 }
 0xa79   : > { %6402 = vmatpush3.bf16.msra.mxu0 %v6399_v5  ;;  %v2226_v50 = vmul.f32 2.0, %v7679_v6 }
 0xa7a   : > { %v6403_v9 = vpack.c.bf16 %v7679_v6, %v7681_v8  ;;  %v2225_v52 = vmul.f32 2.0, %v7681_v8 }
 0xa7c   : > { %6404 = vmatprep.subr.bf16.mxu0 %v6403_v9 }
 0xa7d   : > { %6406 = vmatpush3.bf16.msra.mxu0 %v6403_v9 }
 0xa80   : > { %5716 = vmatmul.mubr.msk.f32.vlgmr.msra.gmra.mrb[34].mxu0 %vm553_vm0, %v7414_v30 }
 0xa81   : > { %5718 = vmatprep.mubr.msk.f32.mxu0 %vm553_vm0, %v7426_v40 }
 0xa84   : > { %5719 = vmatmul.mubr.msk.f32.gmra.mrb[36].mxu0 %vm553_vm0, %v7424_v38 }
 0xa85   : > { %5721 = vmatprep.mubr.msk.f32.mxu0 %vm553_vm0, %v7436_v48 }
 0xa88   : > { %5722 = vmatmul.mubr.msk.f32.gmra.mrb[38].mxu0 %vm553_vm0, %v7432_v45 }
 0xa89   : > { %5724 = vmatprep.mubr.msk.f32.mxu0 %vm553_vm0, %v7446_v56 }
 0xa8c   : > { %5725 = vmatmul.mubr.msk.f32.gmra.mrb[40].mxu0 %vm553_vm0, %v7442_v53 }
 0xa8d   : > { %5771 = vmatprep.mubr.msk.f32.mxu0 %vm553_vm0, %v7416_v32 }
 0xb53   : > { %v5717_v10 = vpop.f32.mrb[34].mxu0 }
 0xb54   : > { %v2180_v11 = vpop.f32.mrb[35].mxu0 }
 0xb55   : > { %v6407_v12 = vpack.c.bf16 %v5717_v10, %v2180_v11 }
 0xb57   : > { %v5720_v13 = vpop.f32.mrb[36].mxu0  ;;  %6408 = vmatprep.subr.bf16.mxu1 %v6407_v12 }
 0xb58   : > { %v2190_v14 = vpop.f32.mrb[37].mxu0  ;;  %6410 = vmatpush3.bf16.msra.mxu1 %v6407_v12 }
 0xb59   : > { %v6411_v16 = vpack.c.bf16 %v5720_v13, %v2190_v14 }
 0xb5b   : > { %v5723_v17 = vpop.f32.mrb[38].mxu0  ;;  %6412 = vmatprep.subr.bf16.mxu1 %v6411_v16 }
 0xb5c   : > { %v2200_v19 = vpop.f32.mrb[39].mxu0  ;;  %6414 = vmatpush3.bf16.msra.mxu1 %v6411_v16 }
 0xb5d   : > { %v6415_v20 = vpack.c.bf16 %v5723_v17, %v2200_v19 }
 0xb5f   : > { %v5726_v21 = vpop.f32.mrb[40].mxu0  ;;  %6416 = vmatprep.subr.bf16.mxu1 %v6415_v20 }
 0xb60   : > { %v2210_v22 = vpop.f32.mrb[41].mxu0  ;;  %6418 = vmatpush3.bf16.msra.mxu1 %v6415_v20 }
 0xb61   : > { %v6419_v23 = vpack.c.bf16 %v5726_v21, %v2210_v22 }
 0xb63   : > { %6420 = vmatprep.subr.bf16.mxu1 %v6419_v23 }
 0xb64   : > { %6422 = vmatpush3.bf16.msra.mxu1 %v6419_v23 }
 0xb67   : > { %5744 = vmatmul.mubr.msk.f32.vlgmr.msra.gmra.mrb[36].mxu1 %vm553_vm0, %v7653_v46 }
 0xb68   : > { %5746 = vmatprep.mubr.msk.f32.mxu1 %vm553_vm0, %v7665_v58 }
 0xb6b   : > { %5747 = vmatmul.mubr.msk.f32.gmra.mrb[38].mxu1 %vm553_vm0, %v7663_v55 }
 0xb6c   : > { %5749 = vmatprep.mubr.msk.f32.mxu1 %vm553_vm0, %v7673_v1 }
 0xb6f   : > { %5750 = vmatmul.mubr.msk.f32.gmra.mrb[40].mxu1 %vm553_vm0, %v7671_v63 }
 0xb70   : > { %5752 = vmatprep.mubr.msk.f32.mxu1 %vm553_vm0, %v7681_v8 }
 0xb73   : > { %5753 = vmatmul.mubr.msk.f32.gmra.mrb[42].mxu1 %vm553_vm0, %v7679_v6 }
 0xc3a   : > { %v5745_v25 = vpop.f32.mrb[36].mxu1 }
 0xc3b   : > { %v7717_v27 = vsub.f32 %v2220_v24, %v5745_v25  ;;  %v2317_v28 = vpop.f32.mrb[37].mxu1 }
 0xc3c   : > { %v7719_v29 = vsub.f32 %v2219_v26, %v2317_v28 }
 0xc3d   : > { %v2470_v8 = vmul.f32 2.0, %v7717_v27 }
 0xc3e   : > { %v5748_v33 = vpop.f32.mrb[38].mxu1  ;;  %5799 = vmatprep.mubr.msk.f32.mxu1 %vm553_vm0, %v7719_v29  ;;  %v6423_v35 = vpack.c.bf16 %v7717_v27, %v7719_v29  ;;  %v2469_v10 = vmul.f32 2.0, %v7719_v29 }
 0xc3f   : > { %v7727_v36 = vsub.f32 %v2222_v31, %v5748_v33  ;;  %v2327_v37 = vpop.f32.mrb[39].mxu1 }
 0xc40   : > { %v7729_v39 = vsub.f32 %v2221_v34, %v2327_v37  ;;  %6424 = vmatprep.subr.bf16.mxu0 %v6423_v35 }
 0xc41   : > { %6426 = vmatpush3.bf16.msra.mxu0 %v6423_v35  ;;  %v2472_v14 = vmul.f32 2.0, %v7727_v36 }
 0xc42   : > { %v5751_v42 = vpop.f32.mrb[40].mxu1  ;;  %v6427_v44 = vpack.c.bf16 %v7727_v36, %v7729_v39  ;;  %v2471_v17 = vmul.f32 2.0, %v7729_v39 }
 0xc43   : > { %v7735_v46 = vsub.f32 %v2224_v41, %v5751_v42  ;;  %v2337_v47 = vpop.f32.mrb[41].mxu1 }
 0xc44   : > { %v7737_v49 = vsub.f32 %v2223_v43, %v2337_v47  ;;  %6428 = vmatprep.subr.bf16.mxu0 %v6427_v44 }
 0xc45   : > { %6430 = vmatpush3.bf16.msra.mxu0 %v6427_v44  ;;  %v2474_v23 = vmul.f32 2.0, %v7735_v46 }
 0xc46   : > { %v5754_v51 = vpop.f32.mrb[42].mxu1  ;;  %v6431_v54 = vpack.c.bf16 %v7735_v46, %v7737_v49  ;;  %v2473_v25 = vmul.f32 2.0, %v7737_v49 }
 0xc47   : > { %v7743_v55 = vsub.f32 %v2226_v50, %v5754_v51  ;;  %v2347_v57 = vpop.f32.mrb[43].mxu1 }
 0xc48   : > { %v7745_v58 = vsub.f32 %v2225_v52, %v2347_v57  ;;  %6432 = vmatprep.subr.bf16.mxu0 %v6431_v54 }
 0xc49   : > { %6434 = vmatpush3.bf16.msra.mxu0 %v6431_v54  ;;  %v2476_v31 = vmul.f32 2.0, %v7743_v55 }
 0xc4a   : > { %v6435_v59 = vpack.c.bf16 %v7743_v55, %v7745_v58  ;;  %v2475_v34 = vmul.f32 2.0, %v7745_v58 }
 0xc4c   : > { %6436 = vmatprep.subr.bf16.mxu0 %v6435_v59 }
 0xc4d   : > { %6438 = vmatpush3.bf16.msra.mxu0 %v6435_v59 }
 0xc50   : > { %5772 = vmatmul.mubr.msk.f32.vlgmr.msra.gmra.mrb[42].mxu0 %vm553_vm0, %v7414_v30 }
 0xc51   : > { %5774 = vmatprep.mubr.msk.f32.mxu0 %vm553_vm0, %v7426_v40 }
 0xc54   : > { %5775 = vmatmul.mubr.msk.f32.gmra.mrb[44].mxu0 %vm553_vm0, %v7424_v38 }
 0xc55   : > { %5777 = vmatprep.mubr.msk.f32.mxu0 %vm553_vm0, %v7436_v48 }
 0xc58   : > { %5778 = vmatmul.mubr.msk.f32.gmra.mrb[46].mxu0 %vm553_vm0, %v7432_v45 }
 0xc59   : > { %5780 = vmatprep.mubr.msk.f32.mxu0 %vm553_vm0, %v7446_v56 }
 0xc5c   : > { %5781 = vmatmul.mubr.msk.f32.gmra.mrb[48].mxu0 %vm553_vm0, %v7442_v53 }
 0xc5d   : > { %5827 = vmatprep.mubr.msk.f32.mxu0 %vm553_vm0, %v7416_v32 }
 0xd23   : > { %v5773_v60 = vpop.f32.mrb[42].mxu0 }
 0xd24   : > { %v2430_v61 = vpop.f32.mrb[43].mxu0 }
 0xd25   : > { %v6439_v62 = vpack.c.bf16 %v5773_v60, %v2430_v61 }
 0xd27   : > { %v5776_v63 = vpop.f32.mrb[44].mxu0  ;;  %6440 = vmatprep.subr.bf16.mxu1 %v6439_v62 }
 0xd28   : > { %v2440_v0 = vpop.f32.mrb[45].mxu0  ;;  %6442 = vmatpush3.bf16.msra.mxu1 %v6439_v62 }
 0xd29   : > { %v6443_v1 = vpack.c.bf16 %v5776_v63, %v2440_v0 }
 0xd2b   : > { %v5779_v2 = vpop.f32.mrb[46].mxu0  ;;  %6444 = vmatprep.subr.bf16.mxu1 %v6443_v1 }
 0xd2c   : > { %v2450_v3 = vpop.f32.mrb[47].mxu0  ;;  %6446 = vmatpush3.bf16.msra.mxu1 %v6443_v1 }
 0xd2d   : > { %v6447_v4 = vpack.c.bf16 %v5779_v2, %v2450_v3 }
 0xd2f   : > { %v5782_v5 = vpop.f32.mrb[48].mxu0  ;;  %6448 = vmatprep.subr.bf16.mxu1 %v6447_v4 }
 0xd30   : > { %v2460_v6 = vpop.f32.mrb[49].mxu0  ;;  %6450 = vmatpush3.bf16.msra.mxu1 %v6447_v4 }
 0xd31   : > { %v6451_v7 = vpack.c.bf16 %v5782_v5, %v2460_v6 }
 0xd33   : > { %6452 = vmatprep.subr.bf16.mxu1 %v6451_v7 }
 0xd34   : > { %6454 = vmatpush3.bf16.msra.mxu1 %v6451_v7 }
 0xd37   : > { %5800 = vmatmul.mubr.msk.f32.vlgmr.msra.gmra.mrb[44].mxu1 %vm553_vm0, %v7717_v27 }
 0xd38   : > { %5802 = vmatprep.mubr.msk.f32.mxu1 %vm553_vm0, %v7729_v39 }
 0xd3b   : > { %5803 = vmatmul.mubr.msk.f32.gmra.mrb[46].mxu1 %vm553_vm0, %v7727_v36 }
 0xd3c   : > { %5805 = vmatprep.mubr.msk.f32.mxu1 %vm553_vm0, %v7737_v49 }
 0xd3f   : > { %5806 = vmatmul.mubr.msk.f32.gmra.mrb[48].mxu1 %vm553_vm0, %v7735_v46 }
 0xd40   : > { %5808 = vmatprep.mubr.msk.f32.mxu1 %vm553_vm0, %v7745_v58 }
 0xd43   : > { %5809 = vmatmul.mubr.msk.f32.gmra.mrb[50].mxu1 %vm553_vm0, %v7743_v55 }
 0xe0a   : > { %v5801_v9 = vpop.f32.mrb[44].mxu1 }
 0xe0b   : > { %v7781_v11 = vsub.f32 %v2470_v8, %v5801_v9  ;;  %v2567_v12 = vpop.f32.mrb[45].mxu1 }
 0xe0c   : > { %v7783_v13 = vsub.f32 %v2469_v10, %v2567_v12 }
 0xe0d   : > { %v2720_v58 = vmul.f32 2.0, %v7781_v11 }
 0xe0e   : > { %v5804_v16 = vpop.f32.mrb[46].mxu1  ;;  %5855 = vmatprep.mubr.msk.f32.mxu1 %vm553_vm0, %v7783_v13  ;;  %v6455_v19 = vpack.c.bf16 %v7781_v11, %v7783_v13  ;;  %v2719_v60 = vmul.f32 2.0, %v7783_v13 }
 0xe0f   : > { %v7791_v20 = vsub.f32 %v2472_v14, %v5804_v16  ;;  %v2577_v21 = vpop.f32.mrb[47].mxu1 }
 0xe10   : > { %v7793_v22 = vsub.f32 %v2471_v17, %v2577_v21  ;;  %6456 = vmatprep.subr.bf16.mxu0 %v6455_v19 }
 0xe11   : > { %6458 = vmatpush3.bf16.msra.mxu0 %v6455_v19  ;;  %v2722_v0 = vmul.f32 2.0, %v7791_v20 }
 0xe12   : > { %v5807_v24 = vpop.f32.mrb[48].mxu1  ;;  %v6459_v26 = vpack.c.bf16 %v7791_v20, %v7793_v22  ;;  %v2721_v2 = vmul.f32 2.0, %v7793_v22 }
 0xe13   : > { %v7799_v27 = vsub.f32 %v2474_v23, %v5807_v24  ;;  %v2587_v28 = vpop.f32.mrb[49].mxu1 }
 0xe14   : > { %v7801_v29 = vsub.f32 %v2473_v25, %v2587_v28  ;;  %6460 = vmatprep.subr.bf16.mxu0 %v6459_v26 }
 0xe15   : > { %6462 = vmatpush3.bf16.msra.mxu0 %v6459_v26  ;;  %v2724_v7 = vmul.f32 2.0, %v7799_v27 }
 0xe16   : > { %v5810_v33 = vpop.f32.mrb[50].mxu1  ;;  %v6463_v35 = vpack.c.bf16 %v7799_v27, %v7801_v29  ;;  %v2723_v9 = vmul.f32 2.0, %v7801_v29 }
 0xe17   : > { %v7807_v36 = vsub.f32 %v2476_v31, %v5810_v33  ;;  %v2597_v37 = vpop.f32.mrb[51].mxu1 }
 0xe18   : > { %v7809_v39 = vsub.f32 %v2475_v34, %v2597_v37  ;;  %6464 = vmatprep.subr.bf16.mxu0 %v6463_v35 }
 0xe19   : > { %6466 = vmatpush3.bf16.msra.mxu0 %v6463_v35  ;;  %v2726_v14 = vmul.f32 2.0, %v7807_v36 }
 0xe1a   : > { %v6467_v41 = vpack.c.bf16 %v7807_v36, %v7809_v39  ;;  %v2725_v17 = vmul.f32 2.0, %v7809_v39 }
 0xe1c   : > { %6468 = vmatprep.subr.bf16.mxu0 %v6467_v41 }
 0xe1d   : > { %6470 = vmatpush3.bf16.msra.mxu0 %v6467_v41 }
 0xe20   : > { %5828 = vmatmul.mubr.msk.f32.vlgmr.msra.gmra.mrb[50].mxu0 %vm553_vm0, %v7414_v30 }
 0xe21   : > { %5830 = vmatprep.mubr.msk.f32.mxu0 %vm553_vm0, %v7426_v40 }
 0xe24   : > { %5831 = vmatmul.mubr.msk.f32.gmra.mrb[52].mxu0 %vm553_vm0, %v7424_v38 }
 0xe25   : > { %5833 = vmatprep.mubr.msk.f32.mxu0 %vm553_vm0, %v7436_v48 }
 0xe28   : > { %5834 = vmatmul.mubr.msk.f32.gmra.mrb[54].mxu0 %vm553_vm0, %v7432_v45 }
 0xe29   : > { %5836 = vmatprep.mubr.msk.f32.mxu0 %vm553_vm0, %v7446_v56 }
 0xe2c   : > { %5837 = vmatmul.mubr.msk.f32.gmra.mrb[56].mxu0 %vm553_vm0, %v7442_v53 }
 0xe2d   : > { %5883 = vmatprep.mubr.msk.f32.mxu0 %vm553_vm0, %v7416_v32 }
 0xef3   : > { %v5829_v42 = vpop.f32.mrb[50].mxu0 }
 0xef4   : > { %v2680_v43 = vpop.f32.mrb[51].mxu0 }
 0xef5   : > { %v6471_v44 = vpack.c.bf16 %v5829_v42, %v2680_v43 }
 0xef7   : > { %v5832_v46 = vpop.f32.mrb[52].mxu0  ;;  %6472 = vmatprep.subr.bf16.mxu1 %v6471_v44 }
 0xef8   : > { %v2690_v47 = vpop.f32.mrb[53].mxu0  ;;  %6474 = vmatpush3.bf16.msra.mxu1 %v6471_v44 }
 0xef9   : > { %v6475_v49 = vpack.c.bf16 %v5832_v46, %v2690_v47 }
 0xefb   : > { %v5835_v50 = vpop.f32.mrb[54].mxu0  ;;  %6476 = vmatprep.subr.bf16.mxu1 %v6475_v49 }
 0xefc   : > { %v2700_v51 = vpop.f32.mrb[55].mxu0  ;;  %6478 = vmatpush3.bf16.msra.mxu1 %v6475_v49 }
 0xefd   : > { %v6479_v52 = vpack.c.bf16 %v5835_v50, %v2700_v51 }
 0xeff   : > { %v5838_v54 = vpop.f32.mrb[56].mxu0  ;;  %6480 = vmatprep.subr.bf16.mxu1 %v6479_v52 }
 0xf00   : > { %v2710_v55 = vpop.f32.mrb[57].mxu0  ;;  %6482 = vmatpush3.bf16.msra.mxu1 %v6479_v52 }
 0xf01   : > { %v6483_v57 = vpack.c.bf16 %v5838_v54, %v2710_v55 }
 0xf03   : > { %6484 = vmatprep.subr.bf16.mxu1 %v6483_v57 }
 0xf04   : > { %6486 = vmatpush3.bf16.msra.mxu1 %v6483_v57 }
 0xf07   : > { %5856 = vmatmul.mubr.msk.f32.vlgmr.msra.gmra.mrb[52].mxu1 %vm553_vm0, %v7781_v11 }
 0xf08   : > { %5858 = vmatprep.mubr.msk.f32.mxu1 %vm553_vm0, %v7793_v22 }
 0xf0b   : > { %5859 = vmatmul.mubr.msk.f32.gmra.mrb[54].mxu1 %vm553_vm0, %v7791_v20 }
 0xf0c   : > { %5861 = vmatprep.mubr.msk.f32.mxu1 %vm553_vm0, %v7801_v29 }
 0xf0f   : > { %5862 = vmatmul.mubr.msk.f32.gmra.mrb[56].mxu1 %vm553_vm0, %v7799_v27 }
 0xf10   : > { %5864 = vmatprep.mubr.msk.f32.mxu1 %vm553_vm0, %v7809_v39 }
 0xf13   : > { %5865 = vmatmul.mubr.msk.f32.gmra.mrb[58].mxu1 %vm553_vm0, %v7807_v36 }
 0xfda   : > { %v5857_v59 = vpop.f32.mrb[52].mxu1 }
 0xfdb   : > { %v7845_v61 = vsub.f32 %v2720_v58, %v5857_v59  ;;  %v2817_v62 = vpop.f32.mrb[53].mxu1 }
 0xfdc   : > { %v7847_v63 = vsub.f32 %v2719_v60, %v2817_v62 }
 0xfdd   : > { %v2970_v39 = vmul.f32 2.0, %v7845_v61 }
 0xfde   : > { %v5860_v1 = vpop.f32.mrb[54].mxu1  ;;  %5911 = vmatprep.mubr.msk.f32.mxu1 %vm553_vm0, %v7847_v63  ;;  %v6487_v3 = vpack.c.bf16 %v7845_v61, %v7847_v63  ;;  %v2969_v42 = vmul.f32 2.0, %v7847_v63 }
 0xfdf   : > { %v7855_v4 = vsub.f32 %v2722_v0, %v5860_v1  ;;  %v2827_v5 = vpop.f32.mrb[55].mxu1 }
 0xfe0   : > { %v7857_v6 = vsub.f32 %v2721_v2, %v2827_v5  ;;  %6488 = vmatprep.subr.bf16.mxu0 %v6487_v3 }
 0xfe1   : > { %6490 = vmatpush3.bf16.msra.mxu0 %v6487_v3  ;;  %v2972_v47 = vmul.f32 2.0, %v7855_v4 }
 0xfe2   : > { %v5863_v8 = vpop.f32.mrb[56].mxu1  ;;  %v6491_v10 = vpack.c.bf16 %v7855_v4, %v7857_v6  ;;  %v2971_v50 = vmul.f32 2.0, %v7857_v6 }
 0xfe3   : > { %v7863_v11 = vsub.f32 %v2724_v7, %v5863_v8  ;;  %v2837_v12 = vpop.f32.mrb[57].mxu1 }
 0xfe4   : > { %v7865_v13 = vsub.f32 %v2723_v9, %v2837_v12  ;;  %6492 = vmatprep.subr.bf16.mxu0 %v6491_v10 }
 0xfe5   : > { %6494 = vmatpush3.bf16.msra.mxu0 %v6491_v10  ;;  %v2974_v57 = vmul.f32 2.0, %v7863_v11 }
 0xfe6   : > { %v5866_v16 = vpop.f32.mrb[58].mxu1  ;;  %v6495_v19 = vpack.c.bf16 %v7863_v11, %v7865_v13  ;;  %v2973_v59 = vmul.f32 2.0, %v7865_v13 }
 0xfe7   : > { %v7871_v20 = vsub.f32 %v2726_v14, %v5866_v16  ;;  %v2847_v21 = vpop.f32.mrb[59].mxu1 }
 0xfe8   : > { %v7873_v22 = vsub.f32 %v2725_v17, %v2847_v21  ;;  %6496 = vmatprep.subr.bf16.mxu0 %v6495_v19 }
 0xfe9   : > { %6498 = vmatpush3.bf16.msra.mxu0 %v6495_v19  ;;  %v2976_v0 = vmul.f32 2.0, %v7871_v20 }
 0xfea   : > { %v6499_v23 = vpack.c.bf16 %v7871_v20, %v7873_v22  ;;  %v2975_v2 = vmul.f32 2.0, %v7873_v22 }
 0xfec   : > { %6500 = vmatprep.subr.bf16.mxu0 %v6499_v23 }
 0xfed   : > { %6502 = vmatpush3.bf16.msra.mxu0 %v6499_v23 }
 0xff0   : > { %5884 = vmatmul.mubr.msk.f32.vlgmr.msra.gmra.mrb[58].mxu0 %vm553_vm0, %v7414_v30 }
 0xff1   : > { %5886 = vmatprep.mubr.msk.f32.mxu0 %vm553_vm0, %v7426_v40 }
 0xff4   : > { %5887 = vmatmul.mubr.msk.f32.gmra.mrb[60].mxu0 %vm553_vm0, %v7424_v38 }
 0xff5   : > { %5889 = vmatprep.mubr.msk.f32.mxu0 %vm553_vm0, %v7436_v48 }
 0xff8   : > { %5890 = vmatmul.mubr.msk.f32.gmra.mrb[62].mxu0 %vm553_vm0, %v7432_v45 }
 0xff9   : > { %5892 = vmatprep.mubr.msk.f32.mxu0 %vm553_vm0, %v7446_v56 }
 0xffc   : > { %5893 = vmatmul.mubr.msk.f32.gmra.mrb[64].mxu0 %vm553_vm0, %v7442_v53 }
 0xffd   : > { %5939 = vmatprep.mubr.msk.f32.mxu0 %vm553_vm0, %v7416_v32 }
0x10c3   : > { %v5885_v24 = vpop.f32.mrb[58].mxu0 }
0x10c4   : > { %v2930_v25 = vpop.f32.mrb[59].mxu0 }
0x10c5   : > { %v6503_v26 = vpack.c.bf16 %v5885_v24, %v2930_v25 }
0x10c7   : > { %v5888_v27 = vpop.f32.mrb[60].mxu0  ;;  %6504 = vmatprep.subr.bf16.mxu1 %v6503_v26 }
0x10c8   : > { %v2940_v28 = vpop.f32.mrb[61].mxu0  ;;  %6506 = vmatpush3.bf16.msra.mxu1 %v6503_v26 }
0x10c9   : > { %v6507_v29 = vpack.c.bf16 %v5888_v27, %v2940_v28 }
0x10cb   : > { %v5891_v31 = vpop.f32.mrb[62].mxu0  ;;  %6508 = vmatprep.subr.bf16.mxu1 %v6507_v29 }
0x10cc   : > { %v2950_v33 = vpop.f32.mrb[63].mxu0  ;;  %6510 = vmatpush3.bf16.msra.mxu1 %v6507_v29 }
0x10cd   : > { %v6511_v34 = vpack.c.bf16 %v5891_v31, %v2950_v33 }
0x10cf   : > { %v5894_v35 = vpop.f32.mrb[64].mxu0  ;;  %6512 = vmatprep.subr.bf16.mxu1 %v6511_v34 }
0x10d0   : > { %v2960_v36 = vpop.f32.mrb[65].mxu0  ;;  %6514 = vmatpush3.bf16.msra.mxu1 %v6511_v34 }
0x10d1   : > { %v6515_v37 = vpack.c.bf16 %v5894_v35, %v2960_v36 }
0x10d3   : > { %6516 = vmatprep.subr.bf16.mxu1 %v6515_v37 }
0x10d4   : > { %6518 = vmatpush3.bf16.msra.mxu1 %v6515_v37 }
0x10d7   : > { %5912 = vmatmul.mubr.msk.f32.vlgmr.msra.gmra.mrb[60].mxu1 %vm553_vm0, %v7845_v61 }
0x10d8   : > { %5914 = vmatprep.mubr.msk.f32.mxu1 %vm553_vm0, %v7857_v6 }
0x10db   : > { %5915 = vmatmul.mubr.msk.f32.gmra.mrb[62].mxu1 %vm553_vm0, %v7855_v4 }
0x10dc   : > { %5917 = vmatprep.mubr.msk.f32.mxu1 %vm553_vm0, %v7865_v13 }
0x10df   : > { %5918 = vmatmul.mubr.msk.f32.gmra.mrb[64].mxu1 %vm553_vm0, %v7863_v11 }
0x10e0   : > { %5920 = vmatprep.mubr.msk.f32.mxu1 %vm553_vm0, %v7873_v22 }
0x10e3   : > { %5921 = vmatmul.mubr.msk.f32.gmra.mrb[66].mxu1 %vm553_vm0, %v7871_v20 }
0x11aa   : > { %v5913_v41 = vpop.f32.mrb[60].mxu1 }
0x11ab   : > { %v7909_v43 = vsub.f32 %v2970_v39, %v5913_v41  ;;  %v3067_v44 = vpop.f32.mrb[61].mxu1 }
0x11ac   : > { %v7911_v46 = vsub.f32 %v2969_v42, %v3067_v44 }
0x11ad   : > { %v3220_v22 = vmul.f32 2.0, %v7909_v43 }
0x11ae   : > { %v5916_v49 = vpop.f32.mrb[62].mxu1  ;;  %5967 = vmatprep.mubr.msk.f32.mxu1 %vm553_vm0, %v7911_v46  ;;  %v6519_v51 = vpack.c.bf16 %v7909_v43, %v7911_v46  ;;  %v3219_v24 = vmul.f32 2.0, %v7911_v46 }
0x11af   : > { %v7919_v52 = vsub.f32 %v2972_v47, %v5916_v49  ;;  %v3077_v54 = vpop.f32.mrb[63].mxu1 }
0x11b0   : > { %v7921_v55 = vsub.f32 %v2971_v50, %v3077_v54  ;;  %6520 = vmatprep.subr.bf16.mxu0 %v6519_v51 }
0x11b1   : > { %6522 = vmatpush3.bf16.msra.mxu0 %v6519_v51  ;;  %v3222_v28 = vmul.f32 2.0, %v7919_v52 }
0x11b2   : > { %v5919_v58 = vpop.f32.mrb[64].mxu1  ;;  %v6523_v60 = vpack.c.bf16 %v7919_v52, %v7921_v55  ;;  %v3221_v31 = vmul.f32 2.0, %v7921_v55 }
0x11b3   : > { %v7927_v61 = vsub.f32 %v2974_v57, %v5919_v58  ;;  %v3087_v62 = vpop.f32.mrb[65].mxu1 }
0x11b4   : > { %v7929_v63 = vsub.f32 %v2973_v59, %v3087_v62  ;;  %6524 = vmatprep.subr.bf16.mxu0 %v6523_v60 }
0x11b5   : > { %6526 = vmatpush3.bf16.msra.mxu0 %v6523_v60  ;;  %v3224_v37 = vmul.f32 2.0, %v7927_v61 }
0x11b6   : > { %v5922_v1 = vpop.f32.mrb[66].mxu1  ;;  %v6527_v3 = vpack.c.bf16 %v7927_v61, %v7929_v63  ;;  %v3223_v41 = vmul.f32 2.0, %v7929_v63 }
0x11b7   : > { %v7935_v4 = vsub.f32 %v2976_v0, %v5922_v1  ;;  %v3097_v5 = vpop.f32.mrb[67].mxu1 }
0x11b8   : > { %v7937_v6 = vsub.f32 %v2975_v2, %v3097_v5  ;;  %6528 = vmatprep.subr.bf16.mxu0 %v6527_v3 }
0x11b9   : > { %6530 = vmatpush3.bf16.msra.mxu0 %v6527_v3  ;;  %v3226_v47 = vmul.f32 2.0, %v7935_v4 }
0x11ba   : > { %v6531_v7 = vpack.c.bf16 %v7935_v4, %v7937_v6  ;;  %v3225_v50 = vmul.f32 2.0, %v7937_v6 }
0x11bc   : > { %6532 = vmatprep.subr.bf16.mxu0 %v6531_v7 }
0x11bd   : > { %6534 = vmatpush3.bf16.msra.mxu0 %v6531_v7 }
0x11c0   : > { %5940 = vmatmul.mubr.msk.f32.vlgmr.msra.gmra.mrb[66].mxu0 %vm553_vm0, %v7414_v30 }
0x11c1   : > { %5942 = vmatprep.mubr.msk.f32.mxu0 %vm553_vm0, %v7426_v40 }
0x11c4   : > { %5943 = vmatmul.mubr.msk.f32.gmra.mrb[68].mxu0 %vm553_vm0, %v7424_v38 }
0x11c5   : > { %5945 = vmatprep.mubr.msk.f32.mxu0 %vm553_vm0, %v7436_v48 }
0x11c8   : > { %5946 = vmatmul.mubr.msk.f32.gmra.mrb[70].mxu0 %vm553_vm0, %v7432_v45 }
0x11c9   : > { %5948 = vmatprep.mubr.msk.f32.mxu0 %vm553_vm0, %v7446_v56 }
0x11cc   : > { %5949 = vmatmul.mubr.msk.f32.gmra.mrb[72].mxu0 %vm553_vm0, %v7442_v53 }
0x11cd   : > { %5995 = vmatprep.mubr.msk.f32.mxu0 %vm553_vm0, %v7416_v32 }
0x1293   : > { %v5941_v8 = vpop.f32.mrb[66].mxu0 }
0x1294   : > { %v3180_v9 = vpop.f32.mrb[67].mxu0 }
0x1295   : > { %v6535_v10 = vpack.c.bf16 %v5941_v8, %v3180_v9 }
0x1297   : > { %v5944_v11 = vpop.f32.mrb[68].mxu0  ;;  %6536 = vmatprep.subr.bf16.mxu1 %v6535_v10 }
0x1298   : > { %v3190_v12 = vpop.f32.mrb[69].mxu0  ;;  %6538 = vmatpush3.bf16.msra.mxu1 %v6535_v10 }
0x1299   : > { %v6539_v13 = vpack.c.bf16 %v5944_v11, %v3190_v12 }
0x129b   : > { %v5947_v14 = vpop.f32.mrb[70].mxu0  ;;  %6540 = vmatprep.subr.bf16.mxu1 %v6539_v13 }
0x129c   : > { %v3200_v16 = vpop.f32.mrb[71].mxu0  ;;  %6542 = vmatpush3.bf16.msra.mxu1 %v6539_v13 }
0x129d   : > { %v6543_v17 = vpack.c.bf16 %v5947_v14, %v3200_v16 }
0x129f   : > { %v5950_v19 = vpop.f32.mrb[72].mxu0  ;;  %6544 = vmatprep.subr.bf16.mxu1 %v6543_v17 }
0x12a0   : > { %v3210_v20 = vpop.f32.mrb[73].mxu0  ;;  %6546 = vmatpush3.bf16.msra.mxu1 %v6543_v17 }
0x12a1   : > { %v6547_v21 = vpack.c.bf16 %v5950_v19, %v3210_v20 }
0x12a3   : > { %6548 = vmatprep.subr.bf16.mxu1 %v6547_v21 }
0x12a4   : > { %6550 = vmatpush3.bf16.msra.mxu1 %v6547_v21 }
0x12a7   : > { %5968 = vmatmul.mubr.msk.f32.vlgmr.msra.gmra.mrb[68].mxu1 %vm553_vm0, %v7909_v43 }
0x12a8   : > { %5970 = vmatprep.mubr.msk.f32.mxu1 %vm553_vm0, %v7921_v55 }
0x12ab   : > { %5971 = vmatmul.mubr.msk.f32.gmra.mrb[70].mxu1 %vm553_vm0, %v7919_v52 }
0x12ac   : > { %5973 = vmatprep.mubr.msk.f32.mxu1 %vm553_vm0, %v7929_v63 }
0x12af   : > { %5974 = vmatmul.mubr.msk.f32.gmra.mrb[72].mxu1 %vm553_vm0, %v7927_v61 }
0x12b0   : > { %5976 = vmatprep.mubr.msk.f32.mxu1 %vm553_vm0, %v7937_v6 }
0x12b3   : > { %5977 = vmatmul.mubr.msk.f32.gmra.mrb[74].mxu1 %vm553_vm0, %v7935_v4 }
0x137a   : > { %v5969_v23 = vpop.f32.mrb[68].mxu1 }
0x137b   : > { %v7973_v25 = vsub.f32 %v3220_v22, %v5969_v23  ;;  %v3317_v26 = vpop.f32.mrb[69].mxu1 }
0x137c   : > { %v7975_v27 = vsub.f32 %v3219_v24, %v3317_v26 }
0x137d   : > { %v3470_v6 = vmul.f32 2.0, %v7973_v25 }
0x137e   : > { %v5972_v29 = vpop.f32.mrb[70].mxu1  ;;  %6023 = vmatprep.mubr.msk.f32.mxu1 %vm553_vm0, %v7975_v27  ;;  %v6551_v33 = vpack.c.bf16 %v7973_v25, %v7975_v27  ;;  %v3469_v8 = vmul.f32 2.0, %v7975_v27 }
0x137f   : > { %v7983_v34 = vsub.f32 %v3222_v28, %v5972_v29  ;;  %v3327_v35 = vpop.f32.mrb[71].mxu1 }
0x1380   : > { %v7985_v36 = vsub.f32 %v3221_v31, %v3327_v35  ;;  %6552 = vmatprep.subr.bf16.mxu0 %v6551_v33 }
0x1381   : > { %6554 = vmatpush3.bf16.msra.mxu0 %v6551_v33  ;;  %v3472_v12 = vmul.f32 2.0, %v7983_v34 }
0x1382   : > { %v5975_v39 = vpop.f32.mrb[72].mxu1  ;;  %v6555_v42 = vpack.c.bf16 %v7983_v34, %v7985_v36  ;;  %v3471_v14 = vmul.f32 2.0, %v7985_v36 }
0x1383   : > { %v7991_v43 = vsub.f32 %v3224_v37, %v5975_v39  ;;  %v3337_v44 = vpop.f32.mrb[73].mxu1 }
0x1384   : > { %v7993_v46 = vsub.f32 %v3223_v41, %v3337_v44  ;;  %6556 = vmatprep.subr.bf16.mxu0 %v6555_v42 }
0x1385   : > { %6558 = vmatpush3.bf16.msra.mxu0 %v6555_v42  ;;  %v3474_v21 = vmul.f32 2.0, %v7991_v43 }
0x1386   : > { %v5978_v49 = vpop.f32.mrb[74].mxu1  ;;  %v6559_v51 = vpack.c.bf16 %v7991_v43, %v7993_v46  ;;  %v3473_v23 = vmul.f32 2.0, %v7993_v46 }
0x1387   : > { %v7999_v52 = vsub.f32 %v3226_v47, %v5978_v49  ;;  %v3347_v54 = vpop.f32.mrb[75].mxu1 }
0x1388   : > { %v8001_v55 = vsub.f32 %v3225_v50, %v3347_v54  ;;  %6560 = vmatprep.subr.bf16.mxu0 %v6559_v51 }
0x1389   : > { %6562 = vmatpush3.bf16.msra.mxu0 %v6559_v51  ;;  %v3476_v28 = vmul.f32 2.0, %v7999_v52 }
0x138a   : > { %v6563_v57 = vpack.c.bf16 %v7999_v52, %v8001_v55  ;;  %v3475_v31 = vmul.f32 2.0, %v8001_v55 }
0x138c   : > { %6564 = vmatprep.subr.bf16.mxu0 %v6563_v57 }
0x138d   : > { %6566 = vmatpush3.bf16.msra.mxu0 %v6563_v57 }
0x1390   : > { %5996 = vmatmul.mubr.msk.f32.vlgmr.msra.gmra.mrb[74].mxu0 %vm553_vm0, %v7414_v30 }
0x1391   : > { %5998 = vmatprep.mubr.msk.f32.mxu0 %vm553_vm0, %v7426_v40 }
0x1394   : > { %5999 = vmatmul.mubr.msk.f32.gmra.mrb[76].mxu0 %vm553_vm0, %v7424_v38 }
0x1395   : > { %6001 = vmatprep.mubr.msk.f32.mxu0 %vm553_vm0, %v7436_v48 }
0x1398   : > { %6002 = vmatmul.mubr.msk.f32.gmra.mrb[78].mxu0 %vm553_vm0, %v7432_v45 }
0x1399   : > { %6004 = vmatprep.mubr.msk.f32.mxu0 %vm553_vm0, %v7446_v56 }
0x139c   : > { %6005 = vmatmul.mubr.msk.f32.gmra.mrb[80].mxu0 %vm553_vm0, %v7442_v53 }
0x139d   : > { %6051 = vmatprep.mubr.msk.f32.mxu0 %vm553_vm0, %v7416_v32 }
0x1463   : > { %v5997_v58 = vpop.f32.mrb[74].mxu0 }
0x1464   : > { %v3430_v59 = vpop.f32.mrb[75].mxu0 }
0x1465   : > { %v6567_v60 = vpack.c.bf16 %v5997_v58, %v3430_v59 }
0x1467   : > { %v6000_v61 = vpop.f32.mrb[76].mxu0  ;;  %6568 = vmatprep.subr.bf16.mxu1 %v6567_v60 }
0x1468   : > { %v3440_v62 = vpop.f32.mrb[77].mxu0  ;;  %6570 = vmatpush3.bf16.msra.mxu1 %v6567_v60 }
0x1469   : > { %v6571_v63 = vpack.c.bf16 %v6000_v61, %v3440_v62 }
0x146b   : > { %v6003_v0 = vpop.f32.mrb[78].mxu0  ;;  %6572 = vmatprep.subr.bf16.mxu1 %v6571_v63 }
0x146c   : > { %v3450_v1 = vpop.f32.mrb[79].mxu0  ;;  %6574 = vmatpush3.bf16.msra.mxu1 %v6571_v63 }
0x146d   : > { %v6575_v2 = vpack.c.bf16 %v6003_v0, %v3450_v1 }
0x146f   : > { %v6006_v3 = vpop.f32.mrb[80].mxu0  ;;  %6576 = vmatprep.subr.bf16.mxu1 %v6575_v2 }
0x1470   : > { %v3460_v4 = vpop.f32.mrb[81].mxu0  ;;  %6578 = vmatpush3.bf16.msra.mxu1 %v6575_v2 }
0x1471   : > { %v6579_v5 = vpack.c.bf16 %v6006_v3, %v3460_v4 }
0x1473   : > { %6580 = vmatprep.subr.bf16.mxu1 %v6579_v5 }
0x1474   : > { %6582 = vmatpush3.bf16.msra.mxu1 %v6579_v5 }
0x1477   : > { %6024 = vmatmul.mubr.msk.f32.vlgmr.msra.gmra.mrb[76].mxu1 %vm553_vm0, %v7973_v25 }
0x1478   : > { %6026 = vmatprep.mubr.msk.f32.mxu1 %vm553_vm0, %v7985_v36 }
0x147b   : > { %6027 = vmatmul.mubr.msk.f32.gmra.mrb[78].mxu1 %vm553_vm0, %v7983_v34 }
0x147c   : > { %6029 = vmatprep.mubr.msk.f32.mxu1 %vm553_vm0, %v7993_v46 }
0x147f   : > { %6030 = vmatmul.mubr.msk.f32.gmra.mrb[80].mxu1 %vm553_vm0, %v7991_v43 }
0x1480   : > { %6032 = vmatprep.mubr.msk.f32.mxu1 %vm553_vm0, %v8001_v55 }
0x1483   : > { %6033 = vmatmul.mubr.msk.f32.gmra.mrb[82].mxu1 %vm553_vm0, %v7999_v52 }
0x154a   : > { %v6025_v7 = vpop.f32.mrb[76].mxu1 }
0x154b   : > { %v8037_v9 = vsub.f32 %v3470_v6, %v6025_v7  ;;  %v3567_v10 = vpop.f32.mrb[77].mxu1 }
0x154c   : > { %v8039_v11 = vsub.f32 %v3469_v8, %v3567_v10 }
0x154d   : > { %v3720_v55 = vmul.f32 2.0, %v8037_v9 }
0x154e   : > { %v6028_v13 = vpop.f32.mrb[78].mxu1  ;;  %6079 = vmatprep.mubr.msk.f32.mxu1 %vm553_vm0, %v8039_v11  ;;  %v6583_v16 = vpack.c.bf16 %v8037_v9, %v8039_v11  ;;  %v3719_v58 = vmul.f32 2.0, %v8039_v11 }
0x154f   : > { %v8047_v17 = vsub.f32 %v3472_v12, %v6028_v13  ;;  %v3577_v19 = vpop.f32.mrb[79].mxu1 }
0x1550   : > { %v8049_v20 = vsub.f32 %v3471_v14, %v3577_v19  ;;  %6584 = vmatprep.subr.bf16.mxu0 %v6583_v16 }
0x1551   : > { %6586 = vmatpush3.bf16.msra.mxu0 %v6583_v16  ;;  %v3722_v62 = vmul.f32 2.0, %v8047_v17 }
0x1552   : > { %v6031_v22 = vpop.f32.mrb[80].mxu1  ;;  %v6587_v24 = vpack.c.bf16 %v8047_v17, %v8049_v20  ;;  %v3721_v0 = vmul.f32 2.0, %v8049_v20 }
0x1553   : > { %v8055_v25 = vsub.f32 %v3474_v21, %v6031_v22  ;;  %v3587_v26 = vpop.f32.mrb[81].mxu1 }
0x1554   : > { %v8057_v27 = vsub.f32 %v3473_v23, %v3587_v26  ;;  %6588 = vmatprep.subr.bf16.mxu0 %v6587_v24 }
0x1555   : > { %6590 = vmatpush3.bf16.msra.mxu0 %v6587_v24  ;;  %v3724_v5 = vmul.f32 2.0, %v8055_v25 }
0x1556   : > { %v6034_v29 = vpop.f32.mrb[82].mxu1  ;;  %v6591_v33 = vpack.c.bf16 %v8055_v25, %v8057_v27  ;;  %v3723_v7 = vmul.f32 2.0, %v8057_v27 }
0x1557   : > { %v8063_v34 = vsub.f32 %v3476_v28, %v6034_v29  ;;  %v3597_v35 = vpop.f32.mrb[83].mxu1 }
0x1558   : > { %v8065_v36 = vsub.f32 %v3475_v31, %v3597_v35  ;;  %6592 = vmatprep.subr.bf16.mxu0 %v6591_v33 }
0x1559   : > { %6594 = vmatpush3.bf16.msra.mxu0 %v6591_v33  ;;  %v3726_v12 = vmul.f32 2.0, %v8063_v34 }
0x155a   : > { %v6595_v37 = vpack.c.bf16 %v8063_v34, %v8065_v36  ;;  %v3725_v14 = vmul.f32 2.0, %v8065_v36 }
0x155c   : > { %6596 = vmatprep.subr.bf16.mxu0 %v6595_v37 }
0x155d   : > { %6598 = vmatpush3.bf16.msra.mxu0 %v6595_v37 }
0x1560   : > { %6052 = vmatmul.mubr.msk.f32.vlgmr.msra.gmra.mrb[82].mxu0 %vm553_vm0, %v7414_v30 }
0x1561   : > { %6054 = vmatprep.mubr.msk.f32.mxu0 %vm553_vm0, %v7426_v40 }
0x1564   : > { %6055 = vmatmul.mubr.msk.f32.gmra.mrb[84].mxu0 %vm553_vm0, %v7424_v38 }
0x1565   : > { %6057 = vmatprep.mubr.msk.f32.mxu0 %vm553_vm0, %v7436_v48 }
0x1568   : > { %6058 = vmatmul.mubr.msk.f32.gmra.mrb[86].mxu0 %vm553_vm0, %v7432_v45 }
0x1569   : > { %6060 = vmatprep.mubr.msk.f32.mxu0 %vm553_vm0, %v7446_v56 }
0x156c   : > { %6061 = vmatmul.mubr.msk.f32.gmra.mrb[88].mxu0 %vm553_vm0, %v7442_v53 }
0x156d   : > { %6107 = vmatprep.mubr.msk.f32.mxu0 %vm553_vm0, %v7416_v32 }
0x1633   : > { %v6053_v39 = vpop.f32.mrb[82].mxu0 }
0x1634   : > { %v3680_v41 = vpop.f32.mrb[83].mxu0 }
0x1635   : > { %v6599_v42 = vpack.c.bf16 %v6053_v39, %v3680_v41 }
0x1637   : > { %v6056_v43 = vpop.f32.mrb[84].mxu0  ;;  %6600 = vmatprep.subr.bf16.mxu1 %v6599_v42 }
0x1638   : > { %v3690_v44 = vpop.f32.mrb[85].mxu0  ;;  %6602 = vmatpush3.bf16.msra.mxu1 %v6599_v42 }
0x1639   : > { %v6603_v46 = vpack.c.bf16 %v6056_v43, %v3690_v44 }
0x163b   : > { %v6059_v47 = vpop.f32.mrb[86].mxu0  ;;  %6604 = vmatprep.subr.bf16.mxu1 %v6603_v46 }
0x163c   : > { %v3700_v49 = vpop.f32.mrb[87].mxu0  ;;  %6606 = vmatpush3.bf16.msra.mxu1 %v6603_v46 }
0x163d   : > { %v6607_v50 = vpack.c.bf16 %v6059_v47, %v3700_v49 }
0x163f   : > { %v6062_v51 = vpop.f32.mrb[88].mxu0  ;;  %6608 = vmatprep.subr.bf16.mxu1 %v6607_v50 }
0x1640   : > { %v3710_v52 = vpop.f32.mrb[89].mxu0  ;;  %6610 = vmatpush3.bf16.msra.mxu1 %v6607_v50 }
0x1641   : > { %v6611_v54 = vpack.c.bf16 %v6062_v51, %v3710_v52 }
0x1643   : > { %6612 = vmatprep.subr.bf16.mxu1 %v6611_v54 }
0x1644   : > { %6614 = vmatpush3.bf16.msra.mxu1 %v6611_v54 }
0x1647   : > { %6080 = vmatmul.mubr.msk.f32.vlgmr.msra.gmra.mrb[84].mxu1 %vm553_vm0, %v8037_v9 }
0x1648   : > { %6082 = vmatprep.mubr.msk.f32.mxu1 %vm553_vm0, %v8049_v20 }
0x164b   : > { %6083 = vmatmul.mubr.msk.f32.gmra.mrb[86].mxu1 %vm553_vm0, %v8047_v17 }
0x164c   : > { %6085 = vmatprep.mubr.msk.f32.mxu1 %vm553_vm0, %v8057_v27 }
0x164f   : > { %6086 = vmatmul.mubr.msk.f32.gmra.mrb[88].mxu1 %vm553_vm0, %v8055_v25 }
0x1650   : > { %6088 = vmatprep.mubr.msk.f32.mxu1 %vm553_vm0, %v8065_v36 }
0x1653   : > { %6089 = vmatmul.mubr.msk.f32.gmra.mrb[90].mxu1 %vm553_vm0, %v8063_v34 }
0x171a   : > { %v6081_v57 = vpop.f32.mrb[84].mxu1 }
0x171b   : > { %v8101_v59 = vsub.f32 %v3720_v55, %v6081_v57  ;;  %v3817_v60 = vpop.f32.mrb[85].mxu1 }
0x171c   : > { %v8103_v61 = vsub.f32 %v3719_v58, %v3817_v60 }
0x171e   : > { %v6084_v63 = vpop.f32.mrb[86].mxu1  ;;  %6135 = vmatprep.mubr.msk.f32.mxu1 %vm553_vm0, %v8103_v61  ;;  %v6615_v1 = vpack.c.bf16 %v8101_v59, %v8103_v61  ;;  %v3969_v37 = vmul.f32 2.0, %v8103_v61 }
0x171f   : > { %v8111_v2 = vsub.f32 %v3722_v62, %v6084_v63  ;;  %v3827_v3 = vpop.f32.mrb[87].mxu1 }
0x1720   : > { %v8113_v4 = vsub.f32 %v3721_v0, %v3827_v3  ;;  %6616 = vmatprep.subr.bf16.mxu0 %v6615_v1 }
0x1721   : > { %6618 = vmatpush3.bf16.msra.mxu0 %v6615_v1  ;;  %v3972_v43 = vmul.f32 2.0, %v8111_v2 }
0x1722   : > { %v6087_v6 = vpop.f32.mrb[88].mxu1  ;;  %v6619_v8 = vpack.c.bf16 %v8111_v2, %v8113_v4  ;;  %v3971_v46 = vmul.f32 2.0, %v8113_v4 }
0x1723   : > { %v8119_v9 = vsub.f32 %v3724_v5, %v6087_v6  ;;  %v3837_v10 = vpop.f32.mrb[89].mxu1 }
0x1724   : > { %v8121_v11 = vsub.f32 %v3723_v7, %v3837_v10  ;;  %6620 = vmatprep.subr.bf16.mxu0 %v6619_v8 }
0x1725   : > { %6622 = vmatpush3.bf16.msra.mxu0 %v6619_v8  ;;  %v3974_v52 = vmul.f32 2.0, %v8119_v9 }
0x1726   : > { %v6090_v13 = vpop.f32.mrb[90].mxu1  ;;  %v6623_v16 = vpack.c.bf16 %v8119_v9, %v8121_v11  ;;  %v3973_v55 = vmul.f32 2.0, %v8121_v11 }
0x1727   : > { %v8127_v17 = vsub.f32 %v3726_v12, %v6090_v13  ;;  %v3847_v19 = vpop.f32.mrb[91].mxu1 }
0x1728   : > { %v8129_v20 = vsub.f32 %v3725_v14, %v3847_v19  ;;  %6624 = vmatprep.subr.bf16.mxu0 %v6623_v16 }
0x1729   : > { %6626 = vmatpush3.bf16.msra.mxu0 %v6623_v16  ;;  %v3976_v61 = vmul.f32 2.0, %v8127_v17 }
0x172a   : > { %v6627_v21 = vpack.c.bf16 %v8127_v17, %v8129_v20  ;;  %v3975_v63 = vmul.f32 2.0, %v8129_v20 }
0x172c   : > { %6628 = vmatprep.subr.bf16.mxu0 %v6627_v21 }
0x172d   : > { %6630 = vmatpush3.bf16.msra.mxu0 %v6627_v21 }
0x1730   : > { %6108 = vmatmul.mubr.msk.f32.vlgmr.msra.gmra.mrb[90].mxu0 %vm553_vm0, %v7414_v30 }
0x1731   : > { %6110 = vmatprep.mubr.msk.f32.mxu0 %vm553_vm0, %v7426_v40 }
0x1734   : > { %6111 = vmatmul.mubr.msk.f32.gmra.mrb[92].mxu0 %vm553_vm0, %v7424_v38 }
0x1735   : > { %6113 = vmatprep.mubr.msk.f32.mxu0 %vm553_vm0, %v7436_v48 }
0x1738   : > { %6114 = vmatmul.mubr.msk.f32.gmra.mrb[94].mxu0 %vm553_vm0, %v7432_v45 }
0x1739   : > { %6116 = vmatprep.mubr.msk.f32.mxu0 %vm553_vm0, %v7446_v56 }
0x173c   : > { %6117 = vmatmul.mubr.msk.f32.gmra.mrb[96].mxu0 %vm553_vm0, %v7442_v53 }
0x173d   : > { %6163 = vmatprep.mubr.msk.f32.mxu0 %vm553_vm0, %v7416_v32  ;;  %v3970_v32 = vmul.f32 2.0, %v8101_v59 }
0x1803   : > { %v6109_v22 = vpop.f32.mrb[90].mxu0 }
0x1804   : > { %v3930_v23 = vpop.f32.mrb[91].mxu0 }
0x1805   : > { %v6631_v24 = vpack.c.bf16 %v6109_v22, %v3930_v23 }
0x1807   : > { %v6112_v25 = vpop.f32.mrb[92].mxu0  ;;  %6632 = vmatprep.subr.bf16.mxu1 %v6631_v24 }
0x1808   : > { %v3940_v26 = vpop.f32.mrb[93].mxu0  ;;  %6634 = vmatpush3.bf16.msra.mxu1 %v6631_v24 }
0x1809   : > { %v6635_v27 = vpack.c.bf16 %v6112_v25, %v3940_v26 }
0x180b   : > { %v6115_v28 = vpop.f32.mrb[94].mxu0  ;;  %6636 = vmatprep.subr.bf16.mxu1 %v6635_v27 }
0x180c   : > { %v3950_v29 = vpop.f32.mrb[95].mxu0  ;;  %6638 = vmatpush3.bf16.msra.mxu1 %v6635_v27 }
0x180d   : > { %v6639_v31 = vpack.c.bf16 %v6115_v28, %v3950_v29 }
0x180f   : > { %v6118_v33 = vpop.f32.mrb[96].mxu0  ;;  %6640 = vmatprep.subr.bf16.mxu1 %v6639_v31 }
0x1810   : > { %v3960_v34 = vpop.f32.mrb[97].mxu0  ;;  %6642 = vmatpush3.bf16.msra.mxu1 %v6639_v31 }
0x1811   : > { %v6643_v35 = vpack.c.bf16 %v6118_v33, %v3960_v34 }
0x1813   : > { %6644 = vmatprep.subr.bf16.mxu1 %v6643_v35 }
0x1814   : > { %6646 = vmatpush3.bf16.msra.mxu1 %v6643_v35 }
0x1817   : > { %6136 = vmatmul.mubr.msk.f32.vlgmr.msra.gmra.mrb[92].mxu1 %vm553_vm0, %v8101_v59 }
0x1818   : > { %6138 = vmatprep.mubr.msk.f32.mxu1 %vm553_vm0, %v8113_v4 }
0x181b   : > { %6139 = vmatmul.mubr.msk.f32.gmra.mrb[94].mxu1 %vm553_vm0, %v8111_v2 }
0x181c   : > { %6141 = vmatprep.mubr.msk.f32.mxu1 %vm553_vm0, %v8121_v11 }
0x181f   : > { %6142 = vmatmul.mubr.msk.f32.gmra.mrb[96].mxu1 %vm553_vm0, %v8119_v9 }
0x1820   : > { %6144 = vmatprep.mubr.msk.f32.mxu1 %vm553_vm0, %v8129_v20 }
0x1823   : > { %6145 = vmatmul.mubr.msk.f32.gmra.mrb[98].mxu1 %vm553_vm0, %v8127_v17 }
0x18ea   : > { %v6137_v36 = vpop.f32.mrb[92].mxu1 }
0x18eb   : > { %v8165_v39 = vsub.f32 %v3970_v32, %v6137_v36  ;;  %v4067_v41 = vpop.f32.mrb[93].mxu1 }
0x18ec   : > { %v8167_v42 = vsub.f32 %v3969_v37, %v4067_v41 }
0x18ed   : > { %v4220_v10 = vmul.f32 2.0, %v8165_v39 }
0x18ee   : > { %v6140_v44 = vpop.f32.mrb[94].mxu1  ;;  %6191 = vmatprep.mubr.msk.f32.mxu1 %vm553_vm0, %v8167_v42  ;;  %v6647_v47 = vpack.c.bf16 %v8165_v39, %v8167_v42  ;;  %v4219_v12 = vmul.f32 2.0, %v8167_v42 }
0x18ef   : > { %v8175_v49 = vsub.f32 %v3972_v43, %v6140_v44  ;;  %v4077_v50 = vpop.f32.mrb[95].mxu1 }
0x18f0   : > { %v8177_v51 = vsub.f32 %v3971_v46, %v4077_v50  ;;  %6648 = vmatprep.subr.bf16.mxu0 %v6647_v47 }
0x18f1   : > { %6650 = vmatpush3.bf16.msra.mxu0 %v6647_v47  ;;  %v4222_v17 = vmul.f32 2.0, %v8175_v49 }
0x18f2   : > { %v6143_v54 = vpop.f32.mrb[96].mxu1  ;;  %v6651_v57 = vpack.c.bf16 %v8175_v49, %v8177_v51  ;;  %v4221_v21 = vmul.f32 2.0, %v8177_v51 }
0x18f3   : > { %v8183_v58 = vsub.f32 %v3974_v52, %v6143_v54  ;;  %v4087_v59 = vpop.f32.mrb[97].mxu1 }
0x18f4   : > { %v8185_v60 = vsub.f32 %v3973_v55, %v4087_v59  ;;  %6652 = vmatprep.subr.bf16.mxu0 %v6651_v57 }
0x18f5   : > { %6654 = vmatpush3.bf16.msra.mxu0 %v6651_v57  ;;  %v4224_v25 = vmul.f32 2.0, %v8183_v58 }
0x18f6   : > { %v6146_v62 = vpop.f32.mrb[98].mxu1  ;;  %v6655_v0 = vpack.c.bf16 %v8183_v58, %v8185_v60  ;;  %v4223_v28 = vmul.f32 2.0, %v8185_v60 }
0x18f7   : > { %v8191_v1 = vsub.f32 %v3976_v61, %v6146_v62  ;;  %v4097_v2 = vpop.f32.mrb[99].mxu1 }
0x18f8   : > { %v8193_v3 = vsub.f32 %v3975_v63, %v4097_v2  ;;  %6656 = vmatprep.subr.bf16.mxu0 %v6655_v0 }
0x18f9   : > { %6658 = vmatpush3.bf16.msra.mxu0 %v6655_v0  ;;  %v4226_v34 = vmul.f32 2.0, %v8191_v1 }
0x18fa   : > { %v6659_v4 = vpack.c.bf16 %v8191_v1, %v8193_v3  ;;  %v4225_v36 = vmul.f32 2.0, %v8193_v3 }
0x18fc   : > { %6660 = vmatprep.subr.bf16.mxu0 %v6659_v4 }
0x18fd   : > { %6662 = vmatpush3.bf16.msra.mxu0 %v6659_v4 }
0x1900   : > { %6164 = vmatmul.mubr.msk.f32.vlgmr.msra.gmra.mrb[98].mxu0 %vm553_vm0, %v7414_v30 }
0x1901   : > { %6166 = vmatprep.mubr.msk.f32.mxu0 %vm553_vm0, %v7426_v40 }
0x1904   : > { %6167 = vmatmul.mubr.msk.f32.gmra.mrb[100].mxu0 %vm553_vm0, %v7424_v38 }
0x1905   : > { %6169 = vmatprep.mubr.msk.f32.mxu0 %vm553_vm0, %v7436_v48 }
0x1908   : > { %6170 = vmatmul.mubr.msk.f32.gmra.mrb[102].mxu0 %vm553_vm0, %v7432_v45 }
0x1909   : > { %6172 = vmatprep.mubr.msk.f32.mxu0 %vm553_vm0, %v7446_v56 }
0x190c   : > { %6173 = vmatmul.mubr.msk.f32.gmra.mrb[104].mxu0 %vm553_vm0, %v7442_v53 }
0x190d   : > { %6219 = vmatprep.mubr.msk.f32.mxu0 %vm553_vm0, %v7401_v18 }
0x19d3   : > { %v6165_v30 = vpop.f32.mrb[98].mxu0 }
0x19d4   : > { %v4180_v40 = vpop.f32.mrb[99].mxu0 }
0x19d5   : > { %v6663_v5 = vpack.c.bf16 %v6165_v30, %v4180_v40 }
0x19d7   : > { %v6168_v6 = vpop.f32.mrb[100].mxu0  ;;  %6664 = vmatprep.subr.bf16.mxu1 %v6663_v5 }
0x19d8   : > { %v4190_v38 = vpop.f32.mrb[101].mxu0  ;;  %6666 = vmatpush3.bf16.msra.mxu1 %v6663_v5 }
0x19d9   : > { %v6667_v48 = vpack.c.bf16 %v6168_v6, %v4190_v38 }
0x19db   : > { %v6171_v7 = vpop.f32.mrb[102].mxu0  ;;  %6668 = vmatprep.subr.bf16.mxu1 %v6667_v48 }
0x19dc   : > { %v4200_v45 = vpop.f32.mrb[103].mxu0  ;;  %6670 = vmatpush3.bf16.msra.mxu1 %v6667_v48 }
0x19dd   : > { %v6671_v8 = vpack.c.bf16 %v6171_v7, %v4200_v45 }
0x19df   : > { %v6174_v56 = vpop.f32.mrb[104].mxu0  ;;  %6672 = vmatprep.subr.bf16.mxu1 %v6671_v8 }
0x19e0   : > { %v4210_v9 = vpop.f32.mrb[105].mxu0  ;;  %6674 = vmatpush3.bf16.msra.mxu1 %v6671_v8 }
0x19e1   : > { %v6675_v53 = vpack.c.bf16 %v6174_v56, %v4210_v9 }
0x19e3   : > { %6676 = vmatprep.subr.bf16.mxu1 %v6675_v53 }
0x19e4   : > { %6678 = vmatpush3.bf16.msra.mxu1 %v6675_v53 }
0x19e7   : > { %6192 = vmatmul.mubr.msk.f32.vlgmr.msra.gmra.mrb[100].mxu1 %vm553_vm0, %v8165_v39 }
0x19e8   : > { %6194 = vmatprep.mubr.msk.f32.mxu1 %vm553_vm0, %v8177_v51 }
0x19eb   : > { %6195 = vmatmul.mubr.msk.f32.gmra.mrb[102].mxu1 %vm553_vm0, %v8175_v49 }
0x19ec   : > { %6197 = vmatprep.mubr.msk.f32.mxu1 %vm553_vm0, %v8185_v60 }
0x19ef   : > { %6198 = vmatmul.mubr.msk.f32.gmra.mrb[104].mxu1 %vm553_vm0, %v8183_v58 }
0x19f0   : > { %6200 = vmatprep.mubr.msk.f32.mxu1 %vm553_vm0, %v8193_v3 }
0x19f3   : > { %6201 = vmatmul.mubr.msk.f32.gmra.mrb[106].mxu1 %vm553_vm0, %v8191_v1 }
0x1aba   : > { %v6193_v11 = vpop.f32.mrb[100].mxu1 }
0x1abb   : > { %v4357_v13 = vsub.f32 %v4220_v10, %v6193_v11  ;;  %v4317_v14 = vpop.f32.mrb[101].mxu1 }
0x1abc   : > { %v4356_v16 = vsub.f32 %v4219_v12, %v4317_v14 }
0x1abe   : > { %v6679_v19 = vpack.c.bf16 %v4357_v13, %v4356_v16  ;;  %v6196_v20 = vpop.f32.mrb[102].mxu1 }
0x1abf   : > { %v4359_v22 = vsub.f32 %v4222_v17, %v6196_v20  ;;  %v4327_v23 = vpop.f32.mrb[103].mxu1 }
0x1ac0   : > { %v4358_v24 = vsub.f32 %v4221_v21, %v4327_v23  ;;  %6680 = vmatprep.subr.bf16.mxu0 %v6679_v19 }
0x1ac1   : > { %6682 = vmatpush3.bf16.msra.mxu0 %v6679_v19 }
0x1ac2   : > { %v6683_v26 = vpack.c.bf16 %v4359_v22, %v4358_v24  ;;  %v6199_v27 = vpop.f32.mrb[104].mxu1 }
0x1ac3   : > { %v4361_v29 = vsub.f32 %v4224_v25, %v6199_v27  ;;  %v4337_v31 = vpop.f32.mrb[105].mxu1 }
0x1ac4   : > { %v4360_v33 = vsub.f32 %v4223_v28, %v4337_v31  ;;  %6684 = vmatprep.subr.bf16.mxu0 %v6683_v26 }
0x1ac5   : > { %6686 = vmatpush3.bf16.msra.mxu0 %v6683_v26 }
0x1ac6   : > { %v6687_v35 = vpack.c.bf16 %v4361_v29, %v4360_v33  ;;  %v6202_v32 = vpop.f32.mrb[106].mxu1 }
0x1ac7   : > { %v4363_v37 = vsub.f32 %v4226_v34, %v6202_v32  ;;  %v4347_v39 = vpop.f32.mrb[107].mxu1 }
0x1ac8   : > { %v4362_v41 = vsub.f32 %v4225_v36, %v4347_v39  ;;  %6688 = vmatprep.subr.bf16.mxu0 %v6687_v35 }
0x1ac9   : > { %6690 = vmatpush3.bf16.msra.mxu0 %v6687_v35 }
0x1aca   : > { %v6691_v42 = vpack.c.bf16 %v4363_v37, %v4362_v41 }
0x1acc   : > { %6692 = vmatprep.subr.bf16.mxu0 %v6691_v42 }
0x1acd   : > { %6694 = vmatpush3.bf16.msra.mxu0 %v6691_v42 }
0x1ace   : > { %6222 = vmatprep.subr.msk.mxu0 %vm553_vm0, %v7401_v18 }
0x1ad0   : > { %6220 = vmatmul.mubr.msk.f32.vlgmr.msra.gmra.mrb[106].mxu0 %vm553_vm0, %v7507_v15 }
0x1ad6   : > { %6223 = vmatpush3.xpose.msk.msra.mxu0 %vm553_vm0, %v7401_v18 }
0x1ba3   : > { %v6221_v43 = vpop.f32.mrb[106].mxu0 }
0x1ba4   : > { %v4436_v44 = vpop.f32.mrb[107].mxu0 }
0x1ba5   : > { %6224 = vmatprep.mubr.msk.f32.mxu0 %vm553_vm0, %v4436_v44 }
0x1ba6   : > { %6225 = vmatmul.mubr.msk.f32.vlgmr.msra.gmra.mrb[108].mxu0 %vm553_vm0, %v6221_v43 }
0x1c79   : > { %v6226_v18 = vpop.f32.mrb[108].mxu0 }
0x1c7a   : > { %4530 = vst.msk [vmem:[%s486_s17] sm:$0x1] %vm4529_vm12, %v6226_v18  ;;  %v4517_v15 = vpop.f32.mrb[109].mxu0 }
0x1c7b   : > { %v4526_v46 = vadd.f32 1.0, %v4517_v15 }
0x1c7c   : > { %6924 = shalt.err (!%p6921_p1)
}
0x1c7d   : > { %s6925_s30 = scalar_lea.hbm %s8252_s24, 16  ;;  %s6929_s28 = scalar_lea.hbm %s8345_s11, 32 }
0x1c7e   : > { %p6926_p0 = scmp.ne.s32.totalorder %s8252_s24, %s6925_s30  ;;  %p6930_p9 = scmp.lt.u32.totalorder %s8252_s24, %s8345_s11 }
0x1c7f   : > { %p6931_p12 = scmp.lt.u32.totalorder %s6929_s28, %s6925_s30  ;;  %p6933_p2 = scmp.lt.u32.totalorder %s6925_s30, %s8252_s24 }
0x1c80   : > { %p6927_p6 = pnand %p6926_p0, %p8376_p3 }
0x1c81   : > { %p6932_p10 = por %p6931_p12, %p6930_p9 }
0x1c82   : > { %p6928_p5 = pneg %p6927_p6 }
0x1c83   : > { %p6934_p4 = por %p6933_p2, %p6932_p10 }
0x1c85   : > { %p6935_p7 = pnand %p6934_p4, %p6928_p5 }
0x1c87   : > { %6938 = shalt.err (!%p6935_p7)
}
0x1c88   : > { %6713 = dma.vmem_to_hbm [thread:$0]  (%p8376_p3), %s8254_s19, 16, %s8252_s24, %s4532_s15   ;;  %v4527_v47 = vmul.f32 0.01, %v4526_v46 }
0x1c89   : > { %s8287_s17 = scalar_lea.hbm %s8346_s12, %s4971_s27  ;;  %s4536_s30 = scalar_lea.sflag [#allocation12], %s8244_s20 }
0x1c8a   : > { %4528 = vst.msk [vmem:[%s8257_s29] sm:$0xff] %vm1015_vm3, %v4527_v47  ;;  %s6939_s21 = scalar_lea.vmem %s8291_s16, 128  ;;  %s7030_s25 = smov [#allocation11]  }
0x1c8b   : > { %p6940_p8 = scmp.ne.s32.totalorder %s8291_s16, %s6939_s21  ;;  %s6943_s19 = sshll.u32 %s7030_s25, 4  ;;  %s6944_s19 = int_to_ptr.vmem [resolvable:$false] %s6943_s19 }
0x1c8c   : > { %s6945_s24 = scalar_lea.vmem %s6944_s19, 256  ;;  %p6946_p1 = scmp.lt.s32.totalorder %s8291_s16, %s6944_s19 }
0x1c8d   : > { %p6941_p11 = pnand %p6940_p8, %p8376_p3  ;;  %p6947_p0 = scmp.lt.s32.totalorder %s6945_s24, %s6939_s21 }
0x1c8f   : > { %p6942_p13 = pneg %p6941_p11  ;;  %p6948_p6 = por %p6947_p0, %p6946_p1 }
0x1c91   : > { %p6949_p5 = pnand %p6948_p6, %p6942_p13 }
0x1c93   : > { %6952 = shalt.err (!%p6949_p5)
}
0x1c94   : > { %s6953_s20 = scalar_lea.hbm %s8287_s17, 128  ;;  %s6957_s15 = scalar_lea.hbm %s8346_s12, 256 }
0x1c95   : > { %p6954_p9 = scmp.ne.s32.totalorder %s8287_s17, %s6953_s20  ;;  %p6958_p2 = scmp.lt.u32.totalorder %s8287_s17, %s8346_s12 }
0x1c96   : > { %p6959_p4 = scmp.lt.u32.totalorder %s6957_s15, %s6953_s20  ;;  %p6961_p8 = scmp.lt.u32.totalorder %s6953_s20, %s8287_s17 }
0x1c97   : > { %p6955_p12 = pnand %p6954_p9, %p8376_p3 }
0x1c98   : > { %p6960_p7 = por %p6959_p4, %p6958_p2 }
0x1c99   : > { %p6956_p10 = pneg %p6955_p12 }
0x1c9a   : > { %p6962_p11 = por %p6961_p8, %p6960_p7 }
0x1c9c   : > { %p6963_p13 = pnand %p6962_p11, %p6956_p10 }
0x1c9e   : > { %6966 = shalt.err (!%p6963_p13)
}
0x1c9f   : > { %6714 = dma.vmem_to_hbm [thread:$0]  (%p8376_p3), %s8291_s16, 128, %s8287_s17, %s4536_s30  }
0x1ca0 PF: > { %s8377_s26 = sld [smem:[#allocation20_spill]]  ;;  %s8378_s18 = sld [smem:[#allocation18_spill]] }
0x1ca1   : > { %s8379_s23 = sld [smem:[#allocation23_spill]] }
0x1ca6   : > { %p6745_p1 = scmp.ge.s32.totalorder %s8377_s26, 2  ;;  %s4574_s21 = sand.u32 1, %s8378_s18  }
0x1ca7   : > { %p8380_p0 = scmp.ne.s32.totalorder %s8379_s23, 0  ;;  %s4575_s25 = scalar_lea.sflag [#allocation4], %s4574_s21 }
0x1ca9   : > { %p6731_p6 = pnand %p6745_p1, %p8380_p0 }
0x1cab   : > { %6996 = dma.done.wait (!%p6731_p6), %s4575_s25, 16  }
0x1cac   : > { %6998 = vsyncadd (!%p6731_p6), %s4575_s25, 4294967280  ;;  %s4583_s19 = scalar_lea.sflag [#allocation12], %s4574_s21 }
0x1cad   : > { %7000 = dma.done.wait (!%p6731_p6), %s4583_s19, 128  }
0x1cae   : > { %7002 = vsyncadd (!%p6731_p6), %s4583_s19, 4294967168  ;;  %s8381_s24 = sld [smem:[#allocation21_spill]]  ;;  %s8382_s13 = sld [smem:[#allocation19_spill]] }
0x1caf   : > { %s8383_s23 = sld [smem:[#allocation22_spill]]  ;;  %s8384_s21 = smov %s7009_s22 }
0x1cb4   : > { %p29_p3 = scmp.ge.s32.totalorder %s8381_s24, 4   ;;  %s8385_s22 = smov %s8382_s13 }
0x1cb6   :  { %31 = sbr.rel (!%p29_p3) target bundleno = 8 (0x8), region = 139 }
0x1cbd   :  { %4588 = vsyncpa [#allocation3], 1 }
0x1cbe   :  { %4590 = vsyncpa [#allocation3 + $0x1], 1 }
0x1cbf   :  { %4591 = vsyncpa [#allocation6], 1 }
0x1cc0   :  { %4592 = vsyncpa [#allocation9], 1 }
0x1cc1   :  { %4593 = vsyncpa [#allocation4], 1 }
0x1cc2   :  { %4595 = vsyncpa [#allocation4 + $0x1], 1 }
0x1cc3   :  { %4596 = vsyncpa [#allocation12], 1 }
0x1cc4   :  { %4598 = vsyncpa [#allocation12 + $0x1], 1 }

</bundles_post_ra>
